<compile_context>
chip_gen: v5e
topology: v5e:2x2
jax: 0.10.0
libtpu: 0.0.40
codegen_flags: <defaults>
</compile_context>

<pallas_src>
import functools

import numpy as np
import jax
import jax.numpy as jnp
from jax.experimental import pallas as pl
from jax.experimental.pallas import tpu as pltpu

_BN_EPS = 1e-5
_LRELU_SLOPE = 0.01                      # nn.LeakyReLU() default
_TARGET_ROWS = 1024                      # matmul rows per grid step (C < 128)
_TARGET_ROWS_DEEP = 2048                 # larger tiles for deep (C >= 128) layers
_VMEM_LIMIT_BYTES = 48 * 1024 * 1024     # <= v7x's 64 MiB physical VMEM

# Set by _probe_merge_k(); None -> treated as False (safe per-tap matmuls).
_MERGE_K_SUPPORTED = None


# ----------------------------------------------------------------------------
# Pallas kernels
# ----------------------------------------------------------------------------
def _conv3x3_kernel(*args, n_in, halo, out_w, tm, slope, merge_k):
    """Fused 3x3 conv (+ folded BN affine + LeakyReLU) on one tile of rows.

    Inputs (per fused input j): a row-flattened H-padded window covering
    tm + 2*out_w padded rows (either one ref, or main + 2-row halo refs when
    row-tiled).  dy views are row slices of that window; dx (+/-1 column) taps
    are produced by rolling the per-tap f32 partial sums and masking column
    edges.  Weights are (3, 3C, cout) (kx, ky-major-K) when merge_k else
    (3, 3, C, cout) (ky, kx).
    """
    per_in = 2 if halo else 1
    in_refs = args[:n_in * per_in]
    w_refs = args[n_in * per_in:n_in * per_in + n_in]
    shift_ref = args[n_in * per_in + n_in]
    o_ref = args[n_in * per_in + n_in + 1]
    cout = o_ref.shape[-1]
    f32 = jnp.float32

    acc_l = jnp.zeros((tm, cout), f32)   # kx = 0 taps
    acc_c = jnp.zeros((tm, cout), f32)   # kx = 1 taps
    acc_r = jnp.zeros((tm, cout), f32)   # kx = 2 taps

    for j in range(n_in):
        if halo:
            main = in_refs[2 * j][0]                       # (tm, C)
            hal = in_refs[2 * j + 1][0]                    # (2*out_w, C)
            xw = jnp.concatenate([main, hal], axis=0)      # (tm + 2W, C)
        else:
            xw = in_refs[j][0]                             # (tm + 2W, C)
        x0 = xw[0:tm]                                      # dy = 0 view
        x1 = xw[out_w:tm + out_w]                          # dy = 1 view
        x2 = xw[2 * out_w:tm + 2 * out_w]                  # dy = 2 view
        w = w_refs[j]

        if merge_k:
            xcat = jnp.concatenate([x0, x1, x2], axis=-1)  # (tm, 3C) bf16
            acc_c = acc_c + jnp.dot(xcat, w[1], preferred_element_type=f32)
            if out_w > 1:
                acc_l = acc_l + jnp.dot(xcat, w[0], preferred_element_type=f32)
                acc_r = acc_r + jnp.dot(xcat, w[2], preferred_element_type=f32)
        else:
            for dy, xv in enumerate((x0, x1, x2)):
                acc_c = acc_c + jnp.dot(xv, w[dy, 1], preferred_element_type=f32)
                if out_w > 1:
                    acc_l = acc_l + jnp.dot(xv, w[dy, 0], preferred_element_type=f32)
                    acc_r = acc_r + jnp.dot(xv, w[dy, 2], preferred_element_type=f32)

    y = acc_c + shift_ref[...]
    if out_w > 1:
        # Output row m needs acc_l[m-1] (if col > 0) and acc_r[m+1] (if col <
        # W-1).  Tiles are aligned to image-row boundaries (tm % out_w == 0),
        # so the wrapped rows from the roll land on masked columns.
        wpos = jax.lax.broadcasted_iota(jnp.int32, (tm, 1), 0) % out_w
        sl = pltpu.roll(acc_l, shift=1, axis=0)        # sl[m] = acc_l[m-1]
        sr = pltpu.roll(acc_r, shift=tm - 1, axis=0)   # sr[m] = acc_r[m+1]
        y = y + jnp.where(wpos > 0, sl, 0.0)
        y = y + jnp.where(wpos < out_w - 1, sr, 0.0)
    if slope != 1.0:
        y = jnp.where(y > 0.0, y, slope * y)
    o_ref[0] = y.astype(o_ref.dtype)


def _matmul_bias_kernel(x_ref, w_ref, shift_ref, o_ref, *, slope):
    """out = act((x @ w) + shift) on one tile of rows (1x1 convs)."""
    acc = jnp.dot(x_ref[...], w_ref[...], preferred_element_type=jnp.float32)
    y = acc + shift_ref[...]
    if slope != 1.0:
        y = jnp.where(y > 0.0, y, slope * y)
    o_ref[...] = y.astype(o_ref.dtype)


# ----------------------------------------------------------------------------
# Tiling helpers
# ----------------------------------------------------------------------------
def _pick_row_tile(h, w, target_rows):
    """Image rows per grid step.  Returns (TR, halo).  TR divides H; when
    halo=True, TR is even and W % 8 == 0 so all blocks obey the (8,128) rule
    and the 2-row halo block offset is an integer block index."""
    if h * w <= target_rows or (w % 8) != 0:
        return h, False
    best = None
    tr = 2
    while tr < h:
        if h % tr == 0 and tr * w <= target_rows:
            best = tr
        tr += 2
    if best is None:
        return h, False
    return best, True


def _pick_matmul_tile(m):
    if m <= 2048:
        return m
    for cand in (2048, 1024, 512, 256, 128):
        if m % cand == 0:
            return cand
    return m


# ----------------------------------------------------------------------------
# Conv layers built on the Pallas kernels
# ----------------------------------------------------------------------------
def conv3x3_fused(xs, ws, b, bn=None, slope=_LRELU_SLOPE,
                  out_dtype=jnp.bfloat16, target_rows=None, force_merge=None):
    """3x3 conv (pad=1) + optional folded BN + LeakyReLU.

    xs: list of NHWC inputs whose channel concat forms the conv input (the
        decoder skip-concat is fused by passing [x_skip, x_up]).
    ws: matching list of (3, 3, C_j, cout) HWIO weight slices.
    """
    xs = list(xs)
    ws = list(ws)
    N, H, W, _ = xs[0].shape
    cout = int(ws[0].shape[-1])
    cs = [int(x.shape[-1]) for x in xs]

    if bn is not None:
        s = bn['gamma'] * jax.lax.rsqrt(bn['var'] + _BN_EPS)
        ws = [w * s for w in ws]                       # fold BN scale into weights
        shift = (b - bn['mean']) * s + bn['beta']
    else:
        shift = b
    shift2 = shift.reshape(1, cout).astype(jnp.float32)

    if force_merge is not None:
        merge = bool(force_merge)
    else:
        merge = bool(_MERGE_K_SUPPORTED) if _MERGE_K_SUPPORTED is not None else False

    if target_rows is None:
        target_rows = _TARGET_ROWS_DEEP if max(cs) >= 128 else _TARGET_ROWS
    TR, halo = _pick_row_tile(H, W, target_rows)
    TM = TR * W
    grid = (N, H // TR)

    operands, in_specs = [], []
    for x, c in zip(xs, cs):
        xp = jnp.pad(x.astype(jnp.bfloat16), ((0, 0), (1, 1), (0, 0), (0, 0)))
        xp = xp.reshape(N, (H + 2) * W, c)             # single padded copy (1x, not 3x)
        if halo:
            operands.append(xp)
            in_specs.append(pl.BlockSpec((1, TM, c), lambda n, i: (n, i, 0)))
            operands.append(xp)                        # 2-row halo below the tile
            in_specs.append(pl.BlockSpec(
                (1, 2 * W, c),
                lambda n, i, tr=TR: (n, (i + 1) * tr // 2, 0)))
        else:
            operands.append(xp)
            in_specs.append(pl.BlockSpec((1, (H + 2) * W, c), lambda n, i: (n, 0, 0)))

    for w, c in zip(ws, cs):
        if merge:
            # (kx, ky*C, cout): ky-major K matches [x0|x1|x2] lane concat.
            wq = jnp.transpose(w, (1, 0, 2, 3)).reshape(3, 3 * c, cout)
        else:
            wq = w                                     # (ky, kx, C, cout)
        operands.append(wq.astype(jnp.bfloat16))
        in_specs.append(pl.BlockSpec(tuple(wq.shape),
                                     lambda n, i, nd=wq.ndim: (0,) * nd))
    operands.append(shift2)
    in_specs.append(pl.BlockSpec((1, cout), lambda n, i: (0, 0)))

    kernel = functools.partial(
        _conv3x3_kernel, n_in=len(xs), halo=halo, out_w=W, tm=TM,
        slope=float(slope), merge_k=merge)

    ctot = sum(cs)
    flops = 2 * N * H * W * 9 * ctot * cout
    bytes_accessed = (sum(N * (H + 2) * W * c * 2 for c in cs)
                      + 9 * ctot * cout * 2
                      + N * H * W * cout * jnp.dtype(out_dtype).itemsize)

    out = pl.pallas_call(
        kernel,
        out_shape=jax.ShapeDtypeStruct((N, H * W, cout), out_dtype),
        grid=grid,
        in_specs=in_specs,
        out_specs=pl.BlockSpec((1, TM, cout), lambda n, i: (n, i, 0)),
        compiler_params=pltpu.CompilerParams(
            dimension_semantics=("parallel", "parallel"),
            vmem_limit_bytes=_VMEM_LIMIT_BYTES),
        cost_estimate=pl.CostEstimate(flops=int(flops), transcendentals=0,
                                      bytes_accessed=int(bytes_accessed)),
    )(*operands)
    return out.reshape(N, H, W, cout)


def conv1x1(x, w, b, out_dtype=jnp.bfloat16):
    """1x1 conv (no activation).  x: (N,H,W,C), w: (1,1,C,cout)."""
    N, H, W, C = x.shape
    cout = int(w.shape[-1])
    M = N * H * W
    xb = x.reshape(M, C).astype(jnp.bfloat16)
    wm = w.reshape(C, cout).astype(jnp.bfloat16)
    shift2 = b.reshape(1, cout).astype(jnp.float32)

    TM = _pick_matmul_tile(M)
    grid = (M // TM,)
    out = pl.pallas_call(
        functools.partial(_matmul_bias_kernel, slope=1.0),
        out_shape=jax.ShapeDtypeStruct((M, cout), out_dtype),
        grid=grid,
        in_specs=[pl.BlockSpec((TM, C), lambda i: (i, 0)),
                  pl.BlockSpec((C, cout), lambda i: (0, 0)),
                  pl.BlockSpec((1, cout), lambda i: (0, 0))],
        out_specs=pl.BlockSpec((TM, cout), lambda i: (i, 0)),
        compiler_params=pltpu.CompilerParams(
            dimension_semantics=("parallel",),
            vmem_limit_bytes=_VMEM_LIMIT_BYTES),
        cost_estimate=pl.CostEstimate(
            flops=2 * M * C * cout, transcendentals=0,
            bytes_accessed=M * C * 2 + C * cout * 2
            + M * cout * jnp.dtype(out_dtype).itemsize),
    )(xb, wm, shift2)
    return out.reshape(N, H, W, cout)


def _probe_merge_k():
    """One-time check that the merged-K (unaligned lane concat) conv variant
    lowers/runs on this TPU generation; otherwise fall back to per-tap dots.
    Must be called outside jit (it is, from __main__)."""
    global _MERGE_K_SUPPORTED
    if _MERGE_K_SUPPORTED is not None:
        return _MERGE_K_SUPPORTED
    try:
        x = jnp.ones((1, 4, 8, 8), jnp.float32)
        w = 0.01 * jnp.ones((3, 3, 8, 8), jnp.float32)
        b = jnp.zeros((8,), jnp.float32)
        out = conv3x3_fused([x], [w], b, bn=None, slope=1.0,
                            out_dtype=jnp.float32, force_merge=True)
        jax.block_until_ready(out)
        _MERGE_K_SUPPORTED = bool(jnp.all(jnp.isfinite(out)))
    except Exception:
        _MERGE_K_SUPPORTED = False
    return _MERGE_K_SUPPORTED


# ----------------------------------------------------------------------------
# Glue ops (plain JAX): maxpool, bilinear upsample
# ----------------------------------------------------------------------------
def maxpool2(x):
    N, H, W, C = x.shape
    return x.reshape(N, H // 2, 2, W // 2, 2, C).max(axis=(2, 4))


def upsample_bilinear_x2(x):
    """NHWC bilinear x2, align_corners=True (matches the module's nn.Upsample)."""
    N, H, W, C = x.shape
    Ho, Wo = 2 * H, 2 * W

    def lin_idx(s_in, s_out):
        ratio = 0.0 if s_out == 1 else (s_in - 1) / (s_out - 1)
        pos = jnp.arange(s_out, dtype=jnp.float32) * ratio
        i0 = jnp.clip(jnp.floor(pos).astype(jnp.int32), 0, s_in - 1)
        i1 = jnp.clip(i0 + 1, 0, s_in - 1)
        frac = pos - i0.astype(jnp.float32)
        return i0, i1, frac

    hi0, hi1, hf = lin_idx(H, Ho)
    wi0, wi1, wf = lin_idx(W, Wo)
    xf = x.astype(jnp.float32)                     # interp math in f32
    top = xf[:, hi0]
    bot = xf[:, hi1]
    hf_ = hf[None, :, None, None]
    rows = top * (1.0 - hf_) + bot * hf_
    left = rows[:, :, wi0]
    right = rows[:, :, wi1]
    wf_ = wf[None, None, :, None]
    out = left * (1.0 - wf_) + right * wf_
    return out.astype(x.dtype)


# ----------------------------------------------------------------------------
# Blocks
# ----------------------------------------------------------------------------
def conv_block(xs, p, out_dtype=jnp.bfloat16):
    """Conv->BN->LeakyReLU->Dropout(eval:id)->Conv->BN->LeakyReLU.

    xs: list of NHWC inputs whose channels concat to conv1's in-channels
    (the decoder's torch.cat is fused here by splitting conv1's weight)."""
    cs = [int(x.shape[-1]) for x in xs]
    offs = np.concatenate([[0], np.cumsum(cs)])
    w1 = p['conv1']['w']
    w1s = [w1[:, :, int(offs[j]):int(offs[j + 1]), :] for j in range(len(xs))]
    h = conv3x3_fused(xs, w1s, p['conv1']['b'], bn=p['bn1'], slope=_LRELU_SLOPE)
    h = conv3x3_fused([h], [p['conv2']['w']], p['conv2']['b'], bn=p['bn2'],
                      slope=_LRELU_SLOPE, out_dtype=out_dtype)
    return h


def up_block(x1, x2, p, out_dtype=jnp.bfloat16):
    x1 = conv1x1(x1, p['conv1x1']['w'], p['conv1x1']['b'])
    x1 = upsample_bilinear_x2(x1)
    # torch.cat([x2, x1], dim=1) is fused into the first conv of the block.
    return conv_block([x2, x1], p['conv'], out_dtype=out_dtype)


# ----------------------------------------------------------------------------
# Deterministic parameter initialization (shapes from UNet_tsne.__init__)
# ----------------------------------------------------------------------------
def _init_conv(key, cin, cout, k):
    kw, kb = jax.random.split(key)
    fan_in = cin * k * k
    w = jax.random.normal(kw, (k, k, cin, cout), jnp.float32) / np.sqrt(fan_in)
    b = 0.01 * jax.random.normal(kb, (cout,), jnp.float32)
    return {'w': w, 'b': b}


def _init_bn(key, c):
    kg, kb = jax.random.split(key)
    return {
        'gamma': 1.0 + 0.1 * jax.random.normal(kg, (c,), jnp.float32),
        'beta': 0.01 * jax.random.normal(kb, (c,), jnp.float32),
        'mean': jnp.zeros((c,), jnp.float32),
        'var': jnp.ones((c,), jnp.float32),
    }


def _init_conv_block(key, cin, cout):
    k1, k2, k3, k4 = jax.random.split(key, 4)
    return {
        'conv1': _init_conv(k1, cin, cout, 3), 'bn1': _init_bn(k2, cout),
        'conv2': _init_conv(k3, cout, cout, 3), 'bn2': _init_bn(k4, cout),
    }


def _init_up_block(key, cin1, cin2, cout):
    k1, k2 = jax.random.split(key)
    return {
        'conv1x1': _init_conv(k1, cin1, cin2, 1),
        'conv': _init_conv_block(k2, cin2 * 2, cout),
    }


def init_unet_tsne_params(key, in_chns, class_num):
    ft = [16, 32, 64, 128, 256]
    keys = jax.random.split(key, 10)
    return {
        'in_conv': _init_conv_block(keys[0], in_chns, ft[0]),
        'down1': _init_conv_block(keys[1], ft[0], ft[1]),
        'down2': _init_conv_block(keys[2], ft[1], ft[2]),
        'down3': _init_conv_block(keys[3], ft[2], ft[3]),
        'down4': _init_conv_block(keys[4], ft[3], ft[4]),
        'up1': _init_up_block(keys[5], ft[4], ft[3], ft[3]),
        'up2': _init_up_block(keys[6], ft[3], ft[2], ft[2]),
        'up3': _init_up_block(keys[7], ft[2], ft[1], ft[1]),
        'up4': _init_up_block(keys[8], ft[1], ft[0], ft[0]),
        'out_conv': _init_conv(keys[9], ft[0], class_num, 3),
    }


# ----------------------------------------------------------------------------
# Full forward pass (Encoder + Decoder_tsne)
# ----------------------------------------------------------------------------
def unet_tsne_forward(params, x_nchw):
    x = jnp.transpose(x_nchw, (0, 2, 3, 1))   # NCHW -> NHWC

    # Encoder (intermediates in bf16)
    x0 = conv_block([x], params['in_conv'])
    x1 = conv_block([maxpool2(x0)], params['down1'])
    x2 = conv_block([maxpool2(x1)], params['down2'])
    x3 = conv_block([maxpool2(x2)], params['down3'])
    x4 = conv_block([maxpool2(x3)], params['down4'])

    # Decoder_tsne
    x5 = up_block(x4, x3, params['up1'])
    x6 = up_block(x5, x2, params['up2'])
    x7 = up_block(x6, x1, params['up3'])
    x_last = up_block(x7, x0, params['up4'], out_dtype=jnp.float32)
    output = conv3x3_fused([x_last], [params['out_conv']['w']],
                           params['out_conv']['b'], bn=None, slope=1.0,
                           out_dtype=jnp.float32)

    # back to NCHW for the PyTorch-compatible interface
    output = jnp.transpose(output, (0, 3, 1, 2))
    x_last = jnp.transpose(x_last, (0, 3, 1, 2))
    return output, x_last


if __name__ == "__main__":
    key = jax.random.PRNGKey(0)
    kp, kx, k1, k2, k3, k4, k5 = jax.random.split(key, 7)

    _probe_merge_k()   # decide merged-K vs per-tap matmul path for this chip

    # --- conv3x3 kernel vs lax.conv (single input, whole-image path) ---------
    xt = jax.random.normal(k1, (2, 6, 16, 8), jnp.float32)          # N,H,W,C
    wt = 0.1 * jax.random.normal(k2, (3, 3, 8, 16), jnp.float32)    # ky,kx,ci,co
    bt = 0.1 * jax.random.normal(k3, (16,), jnp.float32)
    got = conv3x3_fused([xt], [wt], bt, bn=None, slope=_LRELU_SLOPE,
                        out_dtype=jnp.float32)
    ref = jax.lax.conv_general_dilated(
        xt, wt, window_strides=(1, 1), padding='SAME',
        dimension_numbers=('NHWC', 'HWIO', 'NHWC')) + bt
    ref = jnp.where(ref > 0, ref, _LRELU_SLOPE * ref)
    err = float(jnp.max(jnp.abs(got - ref)))
    assert err < 0.08, f"conv3x3 (whole-image) mismatch: {err}"

    # --- row-tiled halo path + fused skip-concat (two inputs) ----------------
    xa = jax.random.normal(k4, (1, 16, 16, 8), jnp.float32)
    xb = jax.random.normal(k5, (1, 16, 16, 8), jnp.float32)
    wt2 = 0.1 * jax.random.normal(k2, (3, 3, 16, 16), jnp.float32)
    got2 = conv3x3_fused([xa, xb], [wt2[:, :, :8], wt2[:, :, 8:]], bt,
                         bn=None, slope=_LRELU_SLOPE, out_dtype=jnp.float32,
                         target_rows=64)   # forces TR=4 < H=16 -> halo blocks
    ref2 = jax.lax.conv_general_dilated(
        jnp.concatenate([xa, xb], axis=-1), wt2, window_strides=(1, 1),
        padding='SAME', dimension_numbers=('NHWC', 'HWIO', 'NHWC')) + bt
    ref2 = jnp.where(ref2 > 0, ref2, _LRELU_SLOPE * ref2)
    err2 = float(jnp.max(jnp.abs(got2 - ref2)))
    assert err2 < 0.08, f"conv3x3 (halo / fused-concat) mismatch: {err2}"

    # --- full UNet_tsne forward ----------------------------------------------
    in_chns, class_num = 4, 4
    params = init_unet_tsne_params(kp, in_chns, class_num)
    x = jax.random.normal(kx, (2, in_chns, 16, 16), jnp.float32)     # NCHW

    fwd = jax.jit(unet_tsne_forward)
    output, features = fwd(params, x)
    jax.block_until_ready((output, features))

    assert output.shape == (2, class_num, 16, 16), output.shape
    assert features.shape == (2, 16, 16, 16), features.shape
    assert bool(jnp.all(jnp.isfinite(output))) and bool(jnp.all(jnp.isfinite(features)))
    print("KERNEL_OK")
</pallas_src>

<mosaic_0001>
module attributes {stable_mosaic.version = 11 : i64} {
  func.func @_conv3x3_kernel(%arg0: i32, %arg1: i32, %arg2: memref<1x48x8xbf16, #tpu.memory_space<vmem>>, %arg3: memref<3x24x8xbf16, #tpu.memory_space<vmem>>, %arg4: memref<1x8xf32, #tpu.memory_space<vmem>>, %arg5: memref<1x32x8xf32, #tpu.memory_space<vmem>>) attributes {dimension_semantics = [#tpu.dimension_semantics<parallel>, #tpu.dimension_semantics<parallel>], iteration_bounds = array<i64: 1, 1>, scalar_prefetch = 0 : i64, scratch_operands = 0 : i64, tpu.core_type = #tpu.core_type<tc>, window_params = [{transform_indices = @transform_0, window_bounds = array<i64: 1, 48, 8>}, {pipeline_mode = #tpu.pipeline_mode<synchronous>, transform_indices = @transform_1, window_bounds = array<i64: 3, 24, 8>}, {pipeline_mode = #tpu.pipeline_mode<synchronous>, transform_indices = @transform_2, window_bounds = array<i64: 1, 8>}, {transform_indices = @transform_3, window_bounds = array<i64: 1, 32, 8>}]} {
    %cst = arith.constant 0.000000e+00 : f32
    %0 = vector.broadcast %cst : f32 to vector<32x8xf32>
    %cst_0 = arith.constant 0.000000e+00 : f32
    %1 = vector.broadcast %cst_0 : f32 to vector<32x8xf32>
    %cst_1 = arith.constant 0.000000e+00 : f32
    %2 = vector.broadcast %cst_1 : f32 to vector<32x8xf32>
    %c0 = arith.constant 0 : index
    %c0_2 = arith.constant 0 : index
    %c0_3 = arith.constant 0 : index
    %3 = vector.load %arg2[%c0, %c0_2, %c0_3] : memref<1x48x8xbf16, #tpu.memory_space<vmem>>, vector<1x48x8xbf16>
    %4 = vector.shape_cast %3 : vector<1x48x8xbf16> to vector<48x8xbf16>
    %5 = vector.extract_strided_slice %4 {offsets = [0, 0], sizes = [32, 8], strides = [1, 1]} : vector<48x8xbf16> to vector<32x8xbf16>
    %6 = vector.extract_strided_slice %4 {offsets = [8, 0], sizes = [32, 8], strides = [1, 1]} : vector<48x8xbf16> to vector<32x8xbf16>
    %7 = vector.extract_strided_slice %4 {offsets = [16, 0], sizes = [32, 8], strides = [1, 1]} : vector<48x8xbf16> to vector<32x8xbf16>
    %8 = tpu.concatenate %5, %6, %7 in 1 : vector<32x8xbf16>, vector<32x8xbf16>, vector<32x8xbf16> -> vector<32x24xbf16>
    %c1 = arith.constant 1 : index
    %c0_4 = arith.constant 0 : index
    %c0_5 = arith.constant 0 : index
    %9 = vector.load %arg3[%c1, %c0_4, %c0_5] : memref<3x24x8xbf16, #tpu.memory_space<vmem>>, vector<1x24x8xbf16>
    %10 = vector.shape_cast %9 : vector<1x24x8xbf16> to vector<24x8xbf16>
    %cst_6 = arith.constant dense<0.000000e+00> : vector<32x8xf32>
    %11 = tpu.matmul %8, %10, %cst_6 {dimension_numbers = #tpu.dot_dimension_numbers<[1], [0], [0], [1], [0, 0, 1, 1], [], []>} : vector<32x24xbf16>, vector<24x8xbf16>, vector<32x8xf32> -> vector<32x8xf32>
    %12 = arith.addf %1, %11 : vector<32x8xf32>
    %c0_7 = arith.constant 0 : index
    %c0_8 = arith.constant 0 : index
    %c0_9 = arith.constant 0 : index
    %13 = vector.load %arg3[%c0_7, %c0_8, %c0_9] : memref<3x24x8xbf16, #tpu.memory_space<vmem>>, vector<1x24x8xbf16>
    %14 = vector.shape_cast %13 : vector<1x24x8xbf16> to vector<24x8xbf16>
    %cst_10 = arith.constant dense<0.000000e+00> : vector<32x8xf32>
    %15 = tpu.matmul %8, %14, %cst_10 {dimension_numbers = #tpu.dot_dimension_numbers<[1], [0], [0], [1], [0, 0, 1, 1], [], []>} : vector<32x24xbf16>, vector<24x8xbf16>, vector<32x8xf32> -> vector<32x8xf32>
    %16 = arith.addf %0, %15 : vector<32x8xf32>
    %c2 = arith.constant 2 : index
    %c0_11 = arith.constant 0 : index
    %c0_12 = arith.constant 0 : index
    %17 = vector.load %arg3[%c2, %c0_11, %c0_12] : memref<3x24x8xbf16, #tpu.memory_space<vmem>>, vector<1x24x8xbf16>
    %18 = vector.shape_cast %17 : vector<1x24x8xbf16> to vector<24x8xbf16>
    %cst_13 = arith.constant dense<0.000000e+00> : vector<32x8xf32>
    %19 = tpu.matmul %8, %18, %cst_13 {dimension_numbers = #tpu.dot_dimension_numbers<[1], [0], [0], [1], [0, 0, 1, 1], [], []>} : vector<32x24xbf16>, vector<24x8xbf16>, vector<32x8xf32> -> vector<32x8xf32>
    %20 = arith.addf %2, %19 : vector<32x8xf32>
    %c0_14 = arith.constant 0 : index
    %c0_15 = arith.constant 0 : index
    %21 = vector.load %arg4[%c0_14, %c0_15] : memref<1x8xf32, #tpu.memory_space<vmem>>, vector<1x8xf32>
    %22 = vector.broadcast %21 : vector<1x8xf32> to vector<32x8xf32>
    %23 = arith.addf %12, %22 : vector<32x8xf32>
    %24 = tpu.iota {dimensions = array<i32: 0>} : vector<32x1xi32>
    %c8_i32 = arith.constant 8 : i32
    %c0_i32 = arith.constant 0 : i32
    %25 = arith.cmpi eq, %c8_i32, %c0_i32 : i32
    %c1_i32 = arith.constant 1 : i32
    %26 = arith.select %25, %c1_i32, %c8_i32 : i32
    %27 = vector.broadcast %26 : i32 to vector<32x1xi32>
    %28 = arith.remsi %24, %27 : vector<32x1xi32>
    %c0_i32_16 = arith.constant 0 : i32
    %29 = vector.broadcast %c0_i32_16 : i32 to vector<32x1xi32>
    %30 = arith.cmpi ne, %28, %29 : vector<32x1xi32>
    %c0_i32_17 = arith.constant 0 : i32
    %31 = vector.broadcast %c0_i32_17 : i32 to vector<32x1xi32>
    %32 = arith.cmpi slt, %28, %31 : vector<32x1xi32>
    %c0_i32_18 = arith.constant 0 : i32
    %33 = arith.cmpi slt, %26, %c0_i32_18 : i32
    %34 = vector.broadcast %33 : i1 to vector<32x1xi1>
    %35 = vector.broadcast %34 : vector<32x1xi1> to vector<32x1xi1>
    %36 = arith.xori %32, %35 : vector<32x1xi1>
    %37 = arith.andi %36, %30 : vector<32x1xi1>
    %38 = vector.broadcast %26 : i32 to vector<32x1xi32>
    %39 = arith.addi %28, %38 : vector<32x1xi32>
    %40 = arith.select %37, %39, %28 : vector<32x1xi1>, vector<32x1xi32>
    %c1_i32_19 = arith.constant 1 : i32
    %41 = tpu.dynamic_rotate %16 by %c1_i32_19 dim 0 : vector<32x8xf32>, i32 -> vector<32x8xf32>
    %c31_i32 = arith.constant 31 : i32
    %42 = tpu.dynamic_rotate %20 by %c31_i32 dim 0 : vector<32x8xf32>, i32 -> vector<32x8xf32>
    %c0_i32_20 = arith.constant 0 : i32
    %43 = vector.broadcast %c0_i32_20 : i32 to vector<32x1xi32>
    %44 = arith.cmpi sgt, %40, %43 : vector<32x1xi32>
    %cst_21 = arith.constant 0.000000e+00 : f32
    %45 = vector.shape_cast %44 : vector<32x1xi1> to vector<32x1xi1>
    %46 = vector.broadcast %45 : vector<32x1xi1> to vector<32x8xi1>
    %47 = vector.broadcast %cst_21 : f32 to vector<32x8xf32>
    %48 = arith.select %46, %41, %47 : vector<32x8xi1>, vector<32x8xf32>
    %49 = arith.addf %23, %48 : vector<32x8xf32>
    %c7_i32 = arith.constant 7 : i32
    %50 = vector.broadcast %c7_i32 : i32 to vector<32x1xi32>
    %51 = arith.cmpi slt, %40, %50 : vector<32x1xi32>
    %cst_22 = arith.constant 0.000000e+00 : f32
    %52 = vector.shape_cast %51 : vector<32x1xi1> to vector<32x1xi1>
    %53 = vector.broadcast %52 : vector<32x1xi1> to vector<32x8xi1>
    %54 = vector.broadcast %cst_22 : f32 to vector<32x8xf32>
    %55 = arith.select %53, %42, %54 : vector<32x8xi1>, vector<32x8xf32>
    %56 = arith.addf %49, %55 : vector<32x8xf32>
    %c0_23 = arith.constant 0 : index
    %c0_24 = arith.constant 0 : index
    %c0_25 = arith.constant 0 : index
    %57 = vector.load %arg5[%c0_23, %c0_24, %c0_25] : memref<1x32x8xf32, #tpu.memory_space<vmem>>, vector<1x32x8xf32>
    %58 = vector.shape_cast %57 : vector<1x32x8xf32> to vector<32x8xf32>
    %59 = vector.shape_cast %56 : vector<32x8xf32> to vector<1x32x8xf32>
    tpu.vector_store %arg5[%c0_23, %c0_24, %c0_25], %59 {strides = array<i32>} : memref<1x32x8xf32, #tpu.memory_space<vmem>>, vector<1x32x8xf32>,
    return
  }
  func.func @transform_0(%arg0: i32, %arg1: i32) -> (i32, i32, i32) {
    %c0_i32 = arith.constant 0 : i32
    %c0_i32_0 = arith.constant 0 : i32
    %c0_i32_1 = arith.constant 0 : i32
    return %arg0, %c0_i32, %c0_i32_0 : i32, i32, i32
  }
  func.func @transform_1(%arg0: i32, %arg1: i32) -> (i32, i32, i32) {
    %c0_i32 = arith.constant 0 : i32
    %c0_i32_0 = arith.constant 0 : i32
    %c0_i32_1 = arith.constant 0 : i32
    %c0_i32_2 = arith.constant 0 : i32
    return %c0_i32, %c0_i32_0, %c0_i32_1 : i32, i32, i32
  }
  func.func @transform_2(%arg0: i32, %arg1: i32) -> (i32, i32) {
    %c0_i32 = arith.constant 0 : i32
    %c0_i32_0 = arith.constant 0 : i32
    %c0_i32_1 = arith.constant 0 : i32
    return %c0_i32, %c0_i32_0 : i32, i32
  }
  func.func @transform_3(%arg0: i32, %arg1: i32) -> (i32, i32, i32) {
    %c0_i32 = arith.constant 0 : i32
    %c0_i32_0 = arith.constant 0 : i32
    return %arg0, %arg1, %c0_i32 : i32, i32, i32
  }
}

module attributes {stable_mosaic.version = 11 : i64} {
  func.func @_conv3x3_kernel(%arg0: i32, %arg1: i32, %arg2: memref<1x128x8xbf16, #tpu.memory_space<vmem>>, %arg3: memref<3x3x8x16xbf16, #tpu.memory_space<vmem>>, %arg4: memref<1x16xf32, #tpu.memory_space<vmem>>, %arg5: memref<1x96x16xf32, #tpu.memory_space<vmem>>) attributes {dimension_semantics = [#tpu.dimension_semantics<parallel>, #tpu.dimension_semantics<parallel>], iteration_bounds = array<i64: 2, 1>, scalar_prefetch = 0 : i64, scratch_operands = 0 : i64, tpu.core_type = #tpu.core_type<tc>, window_params = [{transform_indices = @transform_0, window_bounds = array<i64: 1, 128, 8>}, {pipeline_mode = #tpu.pipeline_mode<synchronous>, transform_indices = @transform_1, window_bounds = array<i64: 3, 3, 8, 16>}, {pipeline_mode = #tpu.pipeline_mode<synchronous>, transform_indices = @transform_2, window_bounds = array<i64: 1, 16>}, {transform_indices = @transform_3, window_bounds = array<i64: 1, 96, 16>}]} {
    %cst = arith.constant 0.000000e+00 : f32
    %0 = vector.broadcast %cst : f32 to vector<96x16xf32>
    %cst_0 = arith.constant 0.000000e+00 : f32
    %1 = vector.broadcast %cst_0 : f32 to vector<96x16xf32>
    %cst_1 = arith.constant 0.000000e+00 : f32
    %2 = vector.broadcast %cst_1 : f32 to vector<96x16xf32>
    %c0 = arith.constant 0 : index
    %c0_2 = arith.constant 0 : index
    %c0_3 = arith.constant 0 : index
    %3 = vector.load %arg2[%c0, %c0_2, %c0_3] : memref<1x128x8xbf16, #tpu.memory_space<vmem>>, vector<1x128x8xbf16>
    %4 = vector.shape_cast %3 : vector<1x128x8xbf16> to vector<128x8xbf16>
    %5 = vector.extract_strided_slice %4 {offsets = [0, 0], sizes = [96, 8], strides = [1, 1]} : vector<128x8xbf16> to vector<96x8xbf16>
    %6 = vector.extract_strided_slice %4 {offsets = [16, 0], sizes = [96, 8], strides = [1, 1]} : vector<128x8xbf16> to vector<96x8xbf16>
    %7 = vector.extract_strided_slice %4 {offsets = [32, 0], sizes = [96, 8], strides = [1, 1]} : vector<128x8xbf16> to vector<96x8xbf16>
    %c0_4 = arith.constant 0 : index
    %c1 = arith.constant 1 : index
    %c0_5 = arith.constant 0 : index
    %c0_6 = arith.constant 0 : index
    %8 = vector.load %arg3[%c0_4, %c1, %c0_5, %c0_6] : memref<3x3x8x16xbf16, #tpu.memory_space<vmem>>, vector<1x1x8x16xbf16>
    %9 = vector.shape_cast %8 : vector<1x1x8x16xbf16> to vector<8x16xbf16>
    %cst_7 = arith.constant dense<0.000000e+00> : vector<96x16xf32>
    %10 = tpu.matmul %5, %9, %cst_7 {dimension_numbers = #tpu.dot_dimension_numbers<[1], [0], [0], [1], [0, 0, 1, 1], [], []>} : vector<96x8xbf16>, vector<8x16xbf16>, vector<96x16xf32> -> vector<96x16xf32>
    %11 = arith.addf %1, %10 : vector<96x16xf32>
    %c0_8 = arith.constant 0 : index
    %c0_9 = arith.constant 0 : index
    %c0_10 = arith.constant 0 : index
    %c0_11 = arith.constant 0 : index
    %12 = vector.load %arg3[%c0_8, %c0_9, %c0_10, %c0_11] : memref<3x3x8x16xbf16, #tpu.memory_space<vmem>>, vector<1x1x8x16xbf16>
    %13 = vector.shape_cast %12 : vector<1x1x8x16xbf16> to vector<8x16xbf16>
    %cst_12 = arith.constant dense<0.000000e+00> : vector<96x16xf32>
    %14 = tpu.matmul %5, %13, %cst_12 {dimension_numbers = #tpu.dot_dimension_numbers<[1], [0], [0], [1], [0, 0, 1, 1], [], []>} : vector<96x8xbf16>, vector<8x16xbf16>, vector<96x16xf32> -> vector<96x16xf32>
    %15 = arith.addf %0, %14 : vector<96x16xf32>
    %c0_13 = arith.constant 0 : index
    %c2 = arith.constant 2 : index
    %c0_14 = arith.constant 0 : index
    %c0_15 = arith.constant 0 : index
    %16 = vector.load %arg3[%c0_13, %c2, %c0_14, %c0_15] : memref<3x3x8x16xbf16, #tpu.memory_space<vmem>>, vector<1x1x8x16xbf16>
    %17 = vector.shape_cast %16 : vector<1x1x8x16xbf16> to vector<8x16xbf16>
    %cst_16 = arith.constant dense<0.000000e+00> : vector<96x16xf32>
    %18 = tpu.matmul %5, %17, %cst_16 {dimension_numbers = #tpu.dot_dimension_numbers<[1], [0], [0], [1], [0, 0, 1, 1], [], []>} : vector<96x8xbf16>, vector<8x16xbf16>, vector<96x16xf32> -> vector<96x16xf32>
    %19 = arith.addf %2, %18 : vector<96x16xf32>
    %c1_17 = arith.constant 1 : index
    %c1_18 = arith.constant 1 : index
    %c0_19 = arith.constant 0 : index
    %c0_20 = arith.constant 0 : index
    %20 = vector.load %arg3[%c1_17, %c1_18, %c0_19, %c0_20] : memref<3x3x8x16xbf16, #tpu.memory_space<vmem>>, vector<1x1x8x16xbf16>
    %21 = vector.shape_cast %20 : vector<1x1x8x16xbf16> to vector<8x16xbf16>
    %cst_21 = arith.constant dense<0.000000e+00> : vector<96x16xf32>
    %22 = tpu.matmul %6, %21, %cst_21 {dimension_numbers = #tpu.dot_dimension_numbers<[1], [0], [0], [1], [0, 0, 1, 1], [], []>} : vector<96x8xbf16>, vector<8x16xbf16>, vector<96x16xf32> -> vector<96x16xf32>
    %23 = arith.addf %11, %22 : vector<96x16xf32>
    %c1_22 = arith.constant 1 : index
    %c0_23 = arith.constant 0 : index
    %c0_24 = arith.constant 0 : index
    %c0_25 = arith.constant 0 : index
    %24 = vector.load %arg3[%c1_22, %c0_23, %c0_24, %c0_25] : memref<3x3x8x16xbf16, #tpu.memory_space<vmem>>, vector<1x1x8x16xbf16>
    %25 = vector.shape_cast %24 : vector<1x1x8x16xbf16> to vector<8x16xbf16>
    %cst_26 = arith.constant dense<0.000000e+00> : vector<96x16xf32>
    %26 = tpu.matmul %6, %25, %cst_26 {dimension_numbers = #tpu.dot_dimension_numbers<[1], [0], [0], [1], [0, 0, 1, 1], [], []>} : vector<96x8xbf16>, vector<8x16xbf16>, vector<96x16xf32> -> vector<96x16xf32>
    %27 = arith.addf %15, %26 : vector<96x16xf32>
    %c1_27 = arith.constant 1 : index
    %c2_28 = arith.constant 2 : index
    %c0_29 = arith.constant 0 : index
    %c0_30 = arith.constant 0 : index
    %28 = vector.load %arg3[%c1_27, %c2_28, %c0_29, %c0_30] : memref<3x3x8x16xbf16, #tpu.memory_space<vmem>>, vector<1x1x8x16xbf16>
    %29 = vector.shape_cast %28 : vector<1x1x8x16xbf16> to vector<8x16xbf16>
    %cst_31 = arith.constant dense<0.000000e+00> : vector<96x16xf32>
    %30 = tpu.matmul %6, %29, %cst_31 {dimension_numbers = #tpu.dot_dimension_numbers<[1], [0], [0], [1], [0, 0, 1, 1], [], []>} : vector<96x8xbf16>, vector<8x16xbf16>, vector<96x16xf32> -> vector<96x16xf32>
    %31 = arith.addf %19, %30 : vector<96x16xf32>
    %c2_32 = arith.constant 2 : index
    %c1_33 = arith.constant 1 : index
    %c0_34 = arith.constant 0 : index
    %c0_35 = arith.constant 0 : index
    %32 = vector.load %arg3[%c2_32, %c1_33, %c0_34, %c0_35] : memref<3x3x8x16xbf16, #tpu.memory_space<vmem>>, vector<1x1x8x16xbf16>
    %33 = vector.shape_cast %32 : vector<1x1x8x16xbf16> to vector<8x16xbf16>
    %cst_36 = arith.constant dense<0.000000e+00> : vector<96x16xf32>
    %34 = tpu.matmul %7, %33, %cst_36 {dimension_numbers = #tpu.dot_dimension_numbers<[1], [0], [0], [1], [0, 0, 1, 1], [], []>} : vector<96x8xbf16>, vector<8x16xbf16>, vector<96x16xf32> -> vector<96x16xf32>
    %35 = arith.addf %23, %34 : vector<96x16xf32>
    %c2_37 = arith.constant 2 : index
    %c0_38 = arith.constant 0 : index
    %c0_39 = arith.constant 0 : index
    %c0_40 = arith.constant 0 : index
    %36 = vector.load %arg3[%c2_37, %c0_38, %c0_39, %c0_40] : memref<3x3x8x16xbf16, #tpu.memory_space<vmem>>, vector<1x1x8x16xbf16>
    %37 = vector.shape_cast %36 : vector<1x1x8x16xbf16> to vector<8x16xbf16>
    %cst_41 = arith.constant dense<0.000000e+00> : vector<96x16xf32>
    %38 = tpu.matmul %7, %37, %cst_41 {dimension_numbers = #tpu.dot_dimension_numbers<[1], [0], [0], [1], [0, 0, 1, 1], [], []>} : vector<96x8xbf16>, vector<8x16xbf16>, vector<96x16xf32> -> vector<96x16xf32>
    %39 = arith.addf %27, %38 : vector<96x16xf32>
    %c2_42 = arith.constant 2 : index
    %c2_43 = arith.constant 2 : index
    %c0_44 = arith.constant 0 : index
    %c0_45 = arith.constant 0 : index
    %40 = vector.load %arg3[%c2_42, %c2_43, %c0_44, %c0_45] : memref<3x3x8x16xbf16, #tpu.memory_space<vmem>>, vector<1x1x8x16xbf16>
    %41 = vector.shape_cast %40 : vector<1x1x8x16xbf16> to vector<8x16xbf16>
    %cst_46 = arith.constant dense<0.000000e+00> : vector<96x16xf32>
    %42 = tpu.matmul %7, %41, %cst_46 {dimension_numbers = #tpu.dot_dimension_numbers<[1], [0], [0], [1], [0, 0, 1, 1], [], []>} : vector<96x8xbf16>, vector<8x16xbf16>, vector<96x16xf32> -> vector<96x16xf32>
    %43 = arith.addf %31, %42 : vector<96x16xf32>
    %c0_47 = arith.constant 0 : index
    %c0_48 = arith.constant 0 : index
    %44 = vector.load %arg4[%c0_47, %c0_48] : memref<1x16xf32, #tpu.memory_space<vmem>>, vector<1x16xf32>
    %45 = vector.broadcast %44 : vector<1x16xf32> to vector<96x16xf32>
    %46 = arith.addf %35, %45 : vector<96x16xf32>
    %47 = tpu.iota {dimensions = array<i32: 0>} : vector<96x1xi32>
    %c16_i32 = arith.constant 16 : i32
    %c0_i32 = arith.constant 0 : i32
    %48 = arith.cmpi eq, %c16_i32, %c0_i32 : i32
    %c1_i32 = arith.constant 1 : i32
    %49 = arith.select %48, %c1_i32, %c16_i32 : i32
    %50 = vector.broadcast %49 : i32 to vector<96x1xi32>
    %51 = arith.remsi %47, %50 : vector<96x1xi32>
    %c0_i32_49 = arith.constant 0 : i32
    %52 = vector.broadcast %c0_i32_49 : i32 to vector<96x1xi32>
    %53 = arith.cmpi ne, %51, %52 : vector<96x1xi32>
    %c0_i32_50 = arith.constant 0 : i32
    %54 = vector.broadcast %c0_i32_50 : i32 to vector<96x1xi32>
    %55 = arith.cmpi slt, %51, %54 : vector<96x1xi32>
    %c0_i32_51 = arith.constant 0 : i32
    %56 = arith.cmpi slt, %49, %c0_i32_51 : i32
    %57 = vector.broadcast %56 : i1 to vector<96x1xi1>
    %58 = vector.broadcast %57 : vector<96x1xi1> to vector<96x1xi1>
    %59 = arith.xori %55, %58 : vector<96x1xi1>
    %60 = arith.andi %59, %53 : vector<96x1xi1>
    %61 = vector.broadcast %49 : i32 to vector<96x1xi32>
    %62 = arith.addi %51, %61 : vector<96x1xi32>
    %63 = arith.select %60, %62, %51 : vector<96x1xi1>, vector<96x1xi32>
    %c1_i32_52 = arith.constant 1 : i32
    %64 = tpu.dynamic_rotate %39 by %c1_i32_52 dim 0 : vector<96x16xf32>, i32 -> vector<96x16xf32>
    %c95_i32 = arith.constant 95 : i32
    %65 = tpu.dynamic_rotate %43 by %c95_i32 dim 0 : vector<96x16xf32>, i32 -> vector<96x16xf32>
    %c0_i32_53 = arith.constant 0 : i32
    %66 = vector.broadcast %c0_i32_53 : i32 to vector<96x1xi32>
    %67 = arith.cmpi sgt, %63, %66 : vector<96x1xi32>
    %cst_54 = arith.constant 0.000000e+00 : f32
    %68 = vector.shape_cast %67 : vector<96x1xi1> to vector<96x1xi1>
    %69 = vector.broadcast %68 : vector<96x1xi1> to vector<96x16xi1>
    %70 = vector.broadcast %cst_54 : f32 to vector<96x16xf32>
    %71 = arith.select %69, %64, %70 : vector<96x16xi1>, vector<96x16xf32>
    %72 = arith.addf %46, %71 : vector<96x16xf32>
    %c15_i32 = arith.constant 15 : i32
    %73 = vector.broadcast %c15_i32 : i32 to vector<96x1xi32>
    %74 = arith.cmpi slt, %63, %73 : vector<96x1xi32>
    %cst_55 = arith.constant 0.000000e+00 : f32
    %75 = vector.shape_cast %74 : vector<96x1xi1> to vector<96x1xi1>
    %76 = vector.broadcast %75 : vector<96x1xi1> to vector<96x16xi1>
    %77 = vector.broadcast %cst_55 : f32 to vector<96x16xf32>
    %78 = arith.select %76, %65, %77 : vector<96x16xi1>, vector<96x16xf32>
    %79 = arith.addf %72, %78 : vector<96x16xf32>
    %cst_56 = arith.constant 0.000000e+00 : f32
    %80 = vector.broadcast %cst_56 : f32 to vector<96x16xf32>
    %81 = arith.cmpf ogt, %79, %80 : vector<96x16xf32>
    %cst_57 = arith.constant 0.00999999977 : f32
    %82 = vector.broadcast %cst_57 : f32 to vector<96x16xf32>
    %83 = arith.mulf %82, %79 : vector<96x16xf32>
    %84 = arith.select %81, %79, %83 : vector<96x16xi1>, vector<96x16xf32>
    %c0_58 = arith.constant 0 : index
    %c0_59 = arith.constant 0 : index
    %c0_60 = arith.constant 0 : index
    %85 = vector.load %arg5[%c0_58, %c0_59, %c0_60] : memref<1x96x16xf32, #tpu.memory_space<vmem>>, vector<1x96x16xf32>
    %86 = vector.shape_cast %85 : vector<1x96x16xf32> to vector<96x16xf32>
    %87 = vector.shape_cast %84 : vector<96x16xf32> to vector<1x96x16xf32>
    tpu.vector_store %arg5[%c0_58, %c0_59, %c0_60], %87 {strides = array<i32>} : memref<1x96x16xf32, #tpu.memory_space<vmem>>, vector<1x96x16xf32>,
    return
  }
  func.func @transform_0(%arg0: i32, %arg1: i32) -> (i32, i32, i32) {
    %c0_i32 = arith.constant 0 : i32
    %c0_i32_0 = arith.constant 0 : i32
    %c0_i32_1 = arith.constant 0 : i32
    return %arg0, %c0_i32, %c0_i32_0 : i32, i32, i32
  }
  func.func @transform_1(%arg0: i32, %arg1: i32) -> (i32, i32, i32, i32) {
    %c0_i32 = arith.constant 0 : i32
    %c0_i32_0 = arith.constant 0 : i32
    %c0_i32_1 = arith.constant 0 : i32
    %c0_i32_2 = arith.constant 0 : i32
    %c0_i32_3 = arith.constant 0 : i32
    return %c0_i32, %c0_i32_0, %c0_i32_1, %c0_i32_2 : i32, i32, i32, i32
  }
  func.func @transform_2(%arg0: i32, %arg1: i32) -> (i32, i32) {
    %c0_i32 = arith.constant 0 : i32
    %c0_i32_0 = arith.constant 0 : i32
    %c0_i32_1 = arith.constant 0 : i32
    return %c0_i32, %c0_i32_0 : i32, i32
  }
  func.func @transform_3(%arg0: i32, %arg1: i32) -> (i32, i32, i32) {
    %c0_i32 = arith.constant 0 : i32
    %c0_i32_0 = arith.constant 0 : i32
    return %arg0, %arg1, %c0_i32 : i32, i32, i32
  }
}

</mosaic_0001>

<bundles_post_ra>
// kernel: tpu_custom_call.1
= control target key start
LH: loop header
LB: loop body
LE: loop exit
PB: predicated region body
PF: predicated region fallthrough
CT: control target
= control target key end

     0   :  { %s351_s16 = smov 8   ;;  %s352_s21 = smov 16   ;;  %vm79_vm0 = vcmask 1043456   ;;  %vm46_vm1 = vcmask 64512   ;;  %vm53_vm2 = vcmask 130048   ;;  %vm74_vm3 = vcmask 195584   ;;  %s454_s0 = inlined_call_operand.vmem [shape: bf16[1,48,8], index: 0, kind: input, shape index: {}]   ;;  %s455_s1 = inlined_call_operand.vmem [shape: bf16[3,24,8], index: 1, kind: input, shape index: {}]   ;;  %s456_s2 = inlined_call_operand.vmem [shape: f32[1,8], index: 2, kind: input, shape index: {}]   ;;  %s457_s3 = inlined_call_operand.vmem [shape: f32[1,32,8], index: 3, kind: output, shape index: {}]  }
   0x1   :  { %v347_v0 = vld [vmem:[%s454_s0 + $0xc] sm:$0xff]   ;;  %v338_v1 = vld [vmem:[%s454_s0 + $0x4] sm:$0xff]   ;;  %v302_v5 = vld [vmem:[%s455_s1 + $0x20] sm:$0xf]  ;;  %v172_v29 = vlaneseq }
   0x2   :  { %37 = vrot.lane.b32.xlu1 %v347_v0, %s351_s16  ;;  %35 = vrot.lane.b32.xlu0 %v338_v1, %s351_s16  ;;  %v331_v2 = vld [vmem:[%s454_s0 + $0x10] sm:$0xff]   ;;  %v330_v3 = vld [vmem:[%s454_s0 + $0x8] sm:$0xff]   ;;  %v111_v8 = vunpack.c.l.b16 %v302_v5 }
   0x3   :  { %v64_v4 = vld [vmem:[%s455_s1 + $0x8] sm:$0xf]  ;;  %v293_v6 = vld [vmem:[%s455_s1 + $0x14] sm:$0xf]  ;;  %v316_v16 = vld [vmem:[%s455_s1] sm:$0xff]  ;;  %v410_v31 = vshrl.u32 %v172_v29, 7 }
   0x4   :  { %v70_v7 = vunpack.c.l.b16 %v64_v4  ;;  %v146_v9 = vunpack.c.l.b16 %v293_v6  ;;  %v113_v11 = vpack.c.b16 %v111_v8, %v111_v8  ;;  %v317_v17 = vld [vmem:[%s455_s1 + $0x18] sm:$0xff]  ;;  %v315_v18 = vld [vmem:[%s455_s1 + $0xc] sm:$0xff]  ;;  %v319_v21 = vld [vmem:[%s454_s0] sm:$0xff]  }
   0x5   :  { %v174_v34 = vadd.s32 8, %v410_v31  ;;  %v350_v39 = vld [vmem:[%s456_s2] ss:$0 sm:$0xff]  ;;  %vm229_vm4 = vcmp.lt.s32.totalorder %v410_v31, 1  ;;  %v181_v40 = vand.u32 7, %v410_v31  ;;  %vm238_vm5 = vcmp.lt.s32.totalorder %v410_v31, 7 }
   0x6   :  { %v72_v10 = vpack.c.b16 %v70_v7, %v70_v7  ;;  %v148_v12 = vpack.c.b16 %v146_v9, %v146_v9  ;;  %v116_v14 = vsel %vm79_vm0, %v113_v11, 0  ;;  %v175_v47 = vadd.s32 16, %v410_v31 }
   0x7   :  { %124 = vmatpush.bf16.msra.mxu1 %v116_v14  ;;  %v188_v38 = vand.u32 7, %v174_v34  ;;  %vm243_vm6 = vcmp.gt.s32.totalorder %v181_v40, 0  ;;  %vm263_vm8 = vcmp.lt.s32.totalorder %v181_v40, 7 }
   0x8   :  { %v81_v13 = vsel %vm79_vm0, %v72_v10, 0  ;;  %v151_v15 = vsel %vm79_vm0, %v148_v12, 0  ;;  %v195_v58 = vand.u32 7, %v175_v47 }
   0x9   :  { %89 = vmatpush.bf16.msra.mxu0 %v81_v13  ;;  %344 = vmatpush.bf16.msra.mxu3 %v81_v13  ;;  %vm244_vm7 = vcmp.gt.s32.totalorder %v188_v38, 0  ;;  %vm264_vm9 = vcmp.lt.s32.totalorder %v188_v38, 7 }
   0xa   :  { %44 = vrot.lane.b32.xlu1 %v331_v2, %s352_s21  ;;  %42 = vrot.lane.b32.xlu0 %v330_v3, %s352_s21  ;;  %v176_v2 = vadd.s32 24, %v410_v31  ;;  %vm245_vm10 = vcmp.gt.s32.totalorder %v195_v58, 0  ;;  %vm265_vm11 = vcmp.lt.s32.totalorder %v195_v58, 7 }
   0xb   :  { %159 = vmatpush.bf16.msra.mxu2 %v151_v15  ;;  %125 = vmatpush.bf16.msra.mxu1 %v317_v17 }
   0xc   :  { %v202_v7 = vand.u32 7, %v176_v2 }
   0xd   :  { %90 = vmatpush.bf16.msra.mxu0 %v316_v16  ;;  %345 = vmatpush.bf16.msra.mxu3 %v316_v16 }
   0xe   :  { %vm246_vm12 = vcmp.gt.s32.totalorder %v202_v7, 0  ;;  %vm266_vm13 = vcmp.lt.s32.totalorder %v202_v7, 7 }
   0xf   :  { %160 = vmatpush.bf16.msra.mxu2 %v315_v18 }
  0x74   :  { %v38_v19 = vpop.permute.xlu1 %37  ;;  %v36_v20 = vpop.permute.xlu0 %35 }
  0x75   :  { %v52_v22 = vsel %vm46_vm1, %v330_v3, %v38_v19  ;;  %v49_v23 = vsel %vm46_vm1, %v319_v21, %v36_v20 }
  0x7c   :  { %v45_v24 = vpop.permute.xlu1 %44  ;;  %v43_v25 = vpop.permute.xlu0 %42 }
  0x7d   :  { %v55_v26 = vsel %vm53_vm2, %v49_v23, %v43_v25  ;;  %v57_v27 = vsel %vm53_vm2, %v52_v22, %v45_v24 }
  0x7e   :  { %298 = vmatmul.msk.bf16.vlgmr.msra.gmra.mxu0 %vm74_vm3, %v55_v26  ;;  %299 = vmatmul.msk.bf16.vlgmr.msra.gmra.mxu3 %vm74_vm3, %v57_v27 }
  0x7f   :  { %307 = vmatmul.msk.bf16.vlgmr.msra.gmra.mxu1 %vm74_vm3, %v55_v26  ;;  %313 = vmatmul.msk.bf16.vlgmr.msra.gmra.mxu2 %vm74_vm3, %v55_v26 }
  0x8f   :  { %308 = vmatmul.msk.bf16.gmra.mxu1 %vm74_vm3, %v57_v27  ;;  %314 = vmatmul.msk.bf16.gmra.mxu2 %vm74_vm3, %v57_v27 }
  0xfb   :  { %v92_v28 = vpop.f32.mrf.mxu0 }
  0xfc   :  { %v408_v30 = vpop.f32.mrf.mxu1  ;;  %v225_v42 = vrot.slane %v92_v28, 7 }
  0xfd   :  { %v234_v44 = vrot.slane %v408_v30, 1 }
 0x101   :  { %v97_v32 = vpop.f32.mrf.mxu3 }
 0x102   :  { %v162_v33 = vpop.f32.mrf.mxu2  ;;  %v227_v59 = vrot.slane %v97_v32, 7 }
 0x103   :  { %v94_v35 = vpop.f32.mrf.mxu0  ;;  %v163_v50 = vadd.f32 %v350_v39, %v162_v33 }
 0x104   :  { %v129_v36 = vpop.f32.mrf.mxu1  ;;  %v226_v37 = vrot.slane %v94_v35, 7 }
 0x105   :  { %v235_v41 = vrot.slane %v129_v36, 1 }
 0x106   :  { %v232_v48 = vsel %vm229_vm4, %v225_v42, %v226_v37  ;;  %v231_v4 = vsel %vm229_vm4, %v226_v37, %v227_v59 }
 0x107   :  { %v241_v51 = vsel %vm238_vm5, %v234_v44, %v235_v41  ;;  %v256_v57 = vsel %vm244_vm7, %v232_v48, 0.0  ;;  %v257_v9 = vsel %vm245_vm10, %v231_v4, 0.0 }
 0x108   :  { %v275_v60 = vsel %vm263_vm8, %v241_v51, 0.0 }
 0x109   :  { %v99_v43 = vpop.f32.mrf.mxu3 }
 0x10a   :  { %v228_v45 = vrot.slane %v99_v43, 7  ;;  %v164_v46 = vpop.f32.mrf.mxu2 }
 0x10b   :  { %v165_v49 = vadd.f32 %v350_v39, %v164_v46 }
 0x10c   :  { %v233_v52 = vsel %vm229_vm4, %v228_v45, %v225_v42  ;;  %v132_v53 = vpop.f32.mrf.mxu1  ;;  %v230_v13 = vsel %vm229_vm4, %v227_v59, %v228_v45 }
 0x10d   :  { %v255_v54 = vsel %vm243_vm6, %v233_v52, 0.0  ;;  %v236_v55 = vrot.slane %v132_v53, 1  ;;  %v260_v61 = vadd.f32 %v256_v57, %v165_v49  ;;  %v258_v18 = vsel %vm246_vm12, %v230_v13, 0.0 }
 0x10e   :  { %v259_v56 = vadd.f32 %v255_v54, %v163_v50 }
 0x10f   :  { %v240_v62 = vsel %vm238_vm5, %v235_v41, %v236_v55 }
 0x110   :  { %v279_v63 = vadd.f32 %v275_v60, %v259_v56  ;;  %v276_v0 = vsel %vm264_vm9, %v240_v62, 0.0 }
 0x111   :  { %v280_v1 = vadd.f32 %v276_v0, %v260_v61 }
 0x112   :  { %283 = vst.msk [vmem:[%s457_s3] sm:$0xff] %vm46_vm1, %v279_v63  ;;  %v167_v3 = vpop.f32.mrf.mxu2 }
 0x113   :  { %284 = vst.msk [vmem:[%s457_s3 + $0x8] sm:$0xff] %vm46_vm1, %v280_v1  ;;  %v168_v5 = vadd.f32 %v350_v39, %v167_v3 }
 0x114   :  { %v134_v6 = vpop.f32.mrf.mxu1 }
 0x115   :  { %v237_v8 = vrot.slane %v134_v6, 1  ;;  %v261_v10 = vadd.f32 %v257_v9, %v168_v5 }
 0x117   :  { %v239_v11 = vsel %vm238_vm5, %v236_v55, %v237_v8  ;;  %v242_v16 = vsel %vm238_vm5, %v237_v8, %v234_v44 }
 0x118   :  { %v277_v12 = vsel %vm265_vm11, %v239_v11, 0.0  ;;  %v278_v20 = vsel %vm266_vm13, %v242_v16, 0.0 }
 0x119   :  { %v281_v14 = vadd.f32 %v277_v12, %v261_v10 }
 0x11a   :  { %v169_v15 = vpop.f32.mrf.mxu2 }
 0x11b   :  { %285 = vst.msk [vmem:[%s457_s3 + $0x10] sm:$0xff] %vm46_vm1, %v281_v14  ;;  %v170_v17 = vadd.f32 %v350_v39, %v169_v15 }
 0x11d   :  { %v262_v19 = vadd.f32 %v258_v18, %v170_v17 }
 0x11f   :  { %v282_v21 = vadd.f32 %v278_v20, %v262_v19 }
 0x121   :  { %286 = vst.msk [vmem:[%s457_s3 + $0x18] sm:$0xff] %vm46_vm1, %v282_v21 }

// kernel: tpu_custom_call.1
= control target key start
LH: loop header
LB: loop body
LE: loop exit
PB: predicated region body
PF: predicated region fallthrough
CT: control target
= control target key end

     0   :  { %s1367_s12 = smov 0   ;;  %s1369_s13 = smov 0   ;;  %s1809_s0 = inlined_call_operand.vmem [shape: bf16[2,128,8], index: 0, kind: input, shape index: {}]   ;;  %s1810_s1 = inlined_call_operand.vmem [shape: bf16[3,3,8,16], index: 1, kind: input, shape index: {}]   ;;  %s1811_s2 = inlined_call_operand.vmem [shape: f32[1,16], index: 2, kind: input, shape index: {}]   ;;  %s1812_s3 = inlined_call_operand.vmem [shape: f32[2,96,16], index: 3, kind: output, shape index: {}]  }
   0x1   :  { %s1371_s14 = smov 0  }
   0x2 LB: > { %s25_s15 = sadd.s32 1, %s1341_s13  ;;  %p1185_p0 = scmp.ge.s32.totalorder %s1345_s14, 1  ;;  %s1345_s14 = sphi %s1371_s14, %s13_s14   ;;  %s1341_s13 = sphi %s1369_s13, %s1818_s13   ;;  %s1337_s12 = sphi %s1367_s12, %s1817_s12  }
   0x3   : > { %p27_p1 = scmp.ge.s32.totalorder %s25_s15, 2  ;;  %p151_p2 = scmp.lt.s32.totalorder %s1345_s14, 3 }
   0x5   : > { %s1820_s15 = smov (%p27_p1, %s25_s15), 0  ;;  %p152_p3 = pnand %p1185_p0, %p151_p2 }
   0x6   : > { %p179_p4 = scmp.lt.s32.totalorder (!%p152_p3), %s1337_s12, 1 }
   0x7   : > { %155 = sbr.rel (%p152_p3) target bundleno = 377 (0x179), region = 32 }
   0xc   : > { %v1191_v0 = vld [vmem:[%s1810_s1 + $0x10] sm:$0xf]  ;;  %vm267_vm0 = vcmask 1043456   ;;  %v1232_v2 = vld [vmem:[%s1810_s1 + $0xc] sm:$0xf]  ;;  %s1822_s12 = smov (!%p179_p4, %s1337_s12), 1 }
   0xd   : > { %v269_v1 = vsel %vm267_vm0, %v1191_v0, 0  ;;  %v1189_v3 = vld [vmem:[%s1810_s1 + $0x4] sm:$0xf]  ;;  %v363_v4 = vsel %vm267_vm0, %v1232_v2, 0  ;;  %v213_v6 = vld [vmem:[%s1810_s1] sm:$0xf] }
   0xe   : > { %1294 = vmatpush.bf16.msra.mxu1 %v269_v1  ;;  %1295 = vmatpush.bf16.msra.mxu2 %v269_v1  ;;  %v319_v5 = vsel %vm267_vm0, %v1189_v3, 0  ;;  %v405_v7 = vsel %vm267_vm0, %v213_v6, 0  ;;  %v1245_v8 = vld [vmem:[%s1810_s1 + $0x14] sm:$0xf]  ;;  %s1285_s26 = sshll.u32 %s1822_s12, 6  ;;  %vm248_vm1 = vcmask 64512  }
   0xf   : > { %1296 = vmatpush.bf16.msra.mxu3 %v269_v1  ;;  %278 = vmatpush.bf16.msra.mxu0 %v269_v1  ;;  %v449_v9 = vsel %vm267_vm0, %v1245_v8, 0  ;;  %v1269_v10 = vld [vmem:[%s1810_s1 + $0x18] sm:$0xf]  ;;  %s1414_s4 = scalar_lea.vmem %s1809_s0, %s1285_s26  ;;  %v1258_v16 = vld [vmem:[%s1810_s1 + $0x1c] sm:$0xf]  ;;  %s1297_s17 = smul.u32 96, %s1822_s12 }
  0x10   : > { %v1417_v11 = vld [vmem:[%s1414_s4 + $0x10] sm:$0xff]  ;;  %v1420_v12 = vld [vmem:[%s1414_s4 + $0x20] sm:$0xff]  ;;  %v1287_v14 = vld [vmem:[%s1414_s4 + $0x8] sm:$0xff]  ;;  %v599_v15 = vsel %vm267_vm0, %v1269_v10, 0  ;;  %v543_v19 = vsel %vm267_vm0, %v1258_v16, 0  ;;  %vm1087_vm6 = vcmask 130048  }
  0x11   : > { %v1423_v13 = vld [vmem:[%s1414_s4 + $0x30] sm:$0xff]  ;;  %1217 = vmatmul.msk.bf16.vlgmr.msra.gmra.mxu1 %vm248_vm1, %v1417_v11  ;;  %1219 = vmatmul.msk.bf16.vlgmr.msra.gmra.mxu2 %vm248_vm1, %v1420_v12  ;;  %v1190_v17 = vld [vmem:[%s1810_s1 + $0x8] sm:$0xf]  ;;  %v1276_v18 = vld [vmem:[%s1810_s1 + $0x20] sm:$0xf]  ;;  %s1680_s19 = scalar_lea.vmem %s1812_s3, %s1297_s17 }
  0x12   : > { %372 = vmatpush.bf16.msrb.mxu2 %v363_v4  ;;  %328 = vmatpush.bf16.msrb.mxu1 %v319_v5  ;;  %v491_v20 = vsel %vm267_vm0, %v1190_v17, 0  ;;  %v655_v21 = vsel %vm267_vm0, %v1276_v18, 0  ;;  %v1447_v22 = vld [vmem:[%s1414_s4 + $0x18] sm:$0xff]  ;;  %v1450_v23 = vld [vmem:[%s1414_s4 + $0x28] sm:$0xff]  ;;  %v1286_v24 = vld [vmem:[%s1414_s4] sm:$0xff] }
  0x13   : > { %414 = vmatpush.bf16.msrb.mxu3 %v405_v7  ;;  %458 = vmatpush.bf16.msrb.mxu0 %v449_v9  ;;  %v1293_v2 = vld [vmem:[%s1414_s4 + $0x38] sm:$0xff] }
  0x14   : > { %1221 = vmatmul.msk.bf16.vlgmr.msra.gmra.mxu3 %vm248_vm1, %v1423_v13  ;;  %1216 = vmatmul.msk.bf16.vlgmr.msra.gmra.mxu0 %vm248_vm1, %v1287_v14 }
  0x16   : > { %552 = vmatpush.bf16.msra.mxu2 %v543_v19  ;;  %500 = vmatpush.bf16.msra.mxu1 %v491_v20 }
  0x17   : > { %608 = vmatpush.bf16.msra.mxu3 %v599_v15  ;;  %664 = vmatpush.bf16.msra.mxu0 %v655_v21 }
  0x21   : > { %1218 = vmatmul.msk.bf16.gmra.mxu1 %vm248_vm1, %v1447_v22  ;;  %1220 = vmatmul.msk.bf16.gmra.mxu2 %vm248_vm1, %v1450_v23 }
  0x24   : > { %1239 = vmatmul.msk.bf16.vlgmr.msrb.gmra.mxu3 %vm248_vm1, %v1286_v24  ;;  %1246 = vmatmul.msk.bf16.vlgmr.msrb.gmra.mxu0 %vm248_vm1, %v1287_v14 }
  0x31   : > { %1226 = vmatmul.msk.bf16.vlgmr.msrb.gmra.mxu1 %vm248_vm1, %v1286_v24  ;;  %1233 = vmatmul.msk.bf16.vlgmr.msrb.gmra.mxu2 %vm248_vm1, %v1287_v14 }
  0x34   : > { %1240 = vmatmul.msk.bf16.gmra.mxu3 %vm248_vm1, %v1287_v14  ;;  %1247 = vmatmul.msk.bf16.gmra.mxu0 %vm248_vm1, %v1417_v11 }
  0x41   : > { %1227 = vmatmul.msk.bf16.gmra.mxu1 %vm248_vm1, %v1287_v14  ;;  %1234 = vmatmul.msk.bf16.gmra.mxu2 %vm248_vm1, %v1417_v11 }
  0x44   : > { %1241 = vmatmul.msk.bf16.gmra.mxu3 %vm248_vm1, %v1417_v11  ;;  %1248 = vmatmul.msk.bf16.gmra.mxu0 %vm248_vm1, %v1447_v22 }
  0x51   : > { %1228 = vmatmul.msk.bf16.gmra.mxu1 %vm248_vm1, %v1417_v11  ;;  %1235 = vmatmul.msk.bf16.gmra.mxu2 %vm248_vm1, %v1447_v22 }
  0x54   : > { %1242 = vmatmul.msk.bf16.gmra.mxu3 %vm248_vm1, %v1447_v22  ;;  %1249 = vmatmul.msk.bf16.gmra.mxu0 %vm248_vm1, %v1420_v12 }
  0x61   : > { %1229 = vmatmul.msk.bf16.gmra.mxu1 %vm248_vm1, %v1447_v22  ;;  %1236 = vmatmul.msk.bf16.gmra.mxu2 %vm248_vm1, %v1420_v12 }
  0x64   : > { %1243 = vmatmul.msk.bf16.gmra.mxu3 %vm248_vm1, %v1420_v12  ;;  %1250 = vmatmul.msk.bf16.gmra.mxu0 %vm248_vm1, %v1450_v23 }
  0x71   : > { %1230 = vmatmul.msk.bf16.gmra.mxu1 %vm248_vm1, %v1420_v12  ;;  %1237 = vmatmul.msk.bf16.gmra.mxu2 %vm248_vm1, %v1450_v23 }
  0x74   : > { %1244 = vmatmul.msk.bf16.gmra.mxu3 %vm248_vm1, %v1450_v23  ;;  %1251 = vmatmul.msk.bf16.gmra.mxu0 %vm248_vm1, %v1423_v13 }
  0x81   : > { %1231 = vmatmul.msk.bf16.gmra.mxu1 %vm248_vm1, %v1450_v23  ;;  %1238 = vmatmul.msk.bf16.gmra.mxu2 %vm248_vm1, %v1423_v13 }
  0x84   : > { %1270 = vmatmul.msk.bf16.vlgmr.msra.gmra.mxu3 %vm248_vm1, %v1417_v11  ;;  %1277 = vmatmul.msk.bf16.vlgmr.msra.gmra.mxu0 %vm248_vm1, %v1417_v11 }
  0x8e   : > { %v285_v25 = vpop.f32.mrf.mxu1 }
  0x91   : > { %v280_v26 = vpop.f32.mrf.mxu0  ;;  %1252 = vmatmul.msk.bf16.vlgmr.msra.gmra.mxu1 %vm248_vm1, %v1286_v24  ;;  %1263 = vmatmul.msk.bf16.vlgmr.msra.gmra.mxu2 %vm248_vm1, %v1417_v11 }
  0x94   : > { %1271 = vmatmul.msk.bf16.gmra.mxu3 %vm248_vm1, %v1447_v22  ;;  %1278 = vmatmul.msk.bf16.gmra.mxu0 %vm248_vm1, %v1447_v22  ;;  %v1510_v27 = vpop.f32.mrf.mxu2 }
  0x96   : > { %v287_v29 = vpop.f32.mrf.mxu1 }
  0x97   : > { %v1512_v28 = vpop.f32.mrf.mxu3 }
  0x99   : > { %v282_v30 = vpop.f32.mrf.mxu0 }
  0x9c   : > { %v1514_v31 = vpop.f32.mrf.mxu2 }
  0x9e   : > { %v290_v33 = vpop.f32.mrf.mxu1 }
  0x9f   : > { %v1516_v32 = vpop.f32.mrf.mxu3 }
  0xa1   : > { %v1518_v34 = vpop.f32.mrf.mxu0  ;;  %1253 = vmatmul.msk.bf16.gmra.mxu1 %vm248_vm1, %v1287_v14  ;;  %1264 = vmatmul.msk.bf16.gmra.mxu2 %vm248_vm1, %v1447_v22 }
  0xa4   : > { %1272 = vmatmul.msk.bf16.gmra.mxu3 %vm248_vm1, %v1420_v12  ;;  %1279 = vmatmul.msk.bf16.gmra.mxu0 %vm248_vm1, %v1420_v12  ;;  %v1527_v35 = vpop.f32.mrf.mxu2 }
  0xa6   : > { %v292_v37 = vpop.f32.mrf.mxu1 }
  0xa7   : > { %v416_v36 = vpop.f32.mrf.mxu3 }
  0xa9   : > { %v1529_v38 = vpop.f32.mrf.mxu0 }
  0xac   : > { %v1531_v39 = vpop.f32.mrf.mxu2 }
  0xae   : > { %v330_v41 = vpop.f32.mrf.mxu1 }
  0xaf   : > { %v418_v40 = vpop.f32.mrf.mxu3  ;;  %v1533_v42 = vadd.f32 %v330_v41, %v280_v26 }
  0xb1   : > { %v1535_v43 = vpop.f32.mrf.mxu0  ;;  %1254 = vmatmul.msk.bf16.gmra.mxu1 %vm248_vm1, %v1417_v11  ;;  %1265 = vmatmul.msk.bf16.gmra.mxu2 %vm248_vm1, %v1420_v12 }
  0xb4   : > { %1273 = vmatmul.msk.bf16.gmra.mxu3 %vm248_vm1, %v1450_v23  ;;  %1280 = vmatmul.msk.bf16.gmra.mxu0 %vm248_vm1, %v1450_v23  ;;  %v374_v44 = vpop.f32.mrf.mxu2 }
  0xb5   : > { %v1545_v45 = vadd.f32 %v416_v36, %v374_v44 }
  0xb6   : > { %v332_v47 = vpop.f32.mrf.mxu1 }
  0xb7   : > { %v421_v46 = vpop.f32.mrf.mxu3  ;;  %v1547_v48 = vadd.f32 %v332_v47, %v282_v30 }
  0xb9   : > { %v1549_v49 = vpop.f32.mrf.mxu0 }
  0xbc   : > { %v376_v50 = vpop.f32.mrf.mxu2 }
  0xbd   : > { %v1551_v51 = vadd.f32 %v418_v40, %v376_v50 }
  0xbe   : > { %v335_v53 = vpop.f32.mrf.mxu1 }
  0xbf   : > { %v423_v52 = vpop.f32.mrf.mxu3  ;;  %v1553_v54 = vadd.f32 %v335_v53, %v285_v25 }
  0xc1   : > { %v1555_v55 = vpop.f32.mrf.mxu0  ;;  %1255 = vmatmul.msk.bf16.gmra.mxu1 %vm248_vm1, %v1447_v22  ;;  %1266 = vmatmul.msk.bf16.gmra.mxu2 %vm248_vm1, %v1450_v23 }
  0xc4   : > { %1274 = vmatmul.msk.bf16.gmra.mxu3 %vm248_vm1, %v1423_v13  ;;  %1281 = vmatmul.msk.bf16.gmra.mxu0 %vm248_vm1, %v1423_v13  ;;  %v379_v56 = vpop.f32.mrf.mxu2 }
  0xc5   : > { %v1565_v57 = vadd.f32 %v421_v46, %v379_v56  ;;  %v724_v56 = vlaneseq }
  0xc6   : > { %v337_v59 = vpop.f32.mrf.mxu1 }
  0xc7   : > { %v426_v58 = vpop.f32.mrf.mxu3  ;;  %v1567_v60 = vadd.f32 %v337_v59, %v287_v29  ;;  %v1625_v59 = vshrl.u32 %v724_v56, 7 }
  0xc9   : > { %v1569_v61 = vpop.f32.mrf.mxu0  ;;  %vm893_vm2 = vcmp.lt.s32.totalorder %v1625_v59, 1  ;;  %vm918_vm3 = vcmp.lt.s32.totalorder %v1625_v59, 7 }
  0xcc   : > { %v381_v62 = vpop.f32.mrf.mxu2 }
  0xcd   : > { %v1571_v63 = vadd.f32 %v423_v52, %v381_v62 }
  0xce   : > { %v340_v1 = vpop.f32.mrf.mxu1 }
  0xcf   : > { %v428_v0 = vpop.f32.mrf.mxu3  ;;  %v1574_v3 = vadd.f32 %v340_v1, %v290_v33 }
  0xd1   : > { %v1576_v4 = vpop.f32.mrf.mxu0  ;;  %1256 = vmatmul.msk.bf16.gmra.mxu1 %vm248_vm1, %v1420_v12  ;;  %1267 = vmatmul.msk.bf16.gmra.mxu2 %vm248_vm1, %v1423_v13 }
  0xd4   : > { %1275 = vmatmul.msk.bf16.gmra.mxu3 %vm248_vm1, %v1293_v2  ;;  %1282 = vmatmul.msk.bf16.gmra.mxu0 %vm248_vm1, %v1293_v2  ;;  %v384_v5 = vpop.f32.mrf.mxu2 }
  0xd5   : > { %v1584_v6 = vadd.f32 %v426_v58, %v384_v5 }
  0xd6   : > { %v342_v8 = vpop.f32.mrf.mxu1 }
  0xd7   : > { %v431_v7 = vpop.f32.mrf.mxu3  ;;  %v1586_v9 = vadd.f32 %v342_v8, %v292_v37 }
  0xd9   : > { %v1588_v10 = vpop.f32.mrf.mxu0 }
  0xdc   : > { %v386_v11 = vpop.f32.mrf.mxu2 }
  0xdd   : > { %v1590_v14 = vadd.f32 %v428_v0, %v386_v11 }
  0xde   : > { %v1592_v15 = vpop.f32.mrf.mxu1 }
  0xdf   : > { %v433_v12 = vpop.f32.mrf.mxu3 }
  0xe1   : > { %v1594_v13 = vpop.f32.mrf.mxu0  ;;  %1257 = vmatmul.msk.bf16.gmra.mxu1 %vm248_vm1, %v1450_v23  ;;  %1268 = vmatmul.msk.bf16.gmra.mxu2 %vm248_vm1, %v1293_v2 }
  0xe4   : > { %v389_v16 = vpop.f32.mrf.mxu2 }
  0xe5   : > { %v1599_v17 = vadd.f32 %v431_v7, %v389_v16 }
  0xe6   : > { %v1601_v19 = vpop.f32.mrf.mxu1 }
  0xe7   : > { %v436_v18 = vpop.f32.mrf.mxu3 }
  0xe9   : > { %v1603_v20 = vpop.f32.mrf.mxu0 }
  0xec   : > { %v391_v21 = vpop.f32.mrf.mxu2 }
  0xed   : > { %v1605_v22 = vadd.f32 %v433_v12, %v391_v21 }
  0xee   : > { %v1607_v25 = vpop.f32.mrf.mxu1 }
  0xef   : > { %v438_v24 = vpop.f32.mrf.mxu3 }
  0xf1   : > { %v1609_v26 = vpop.f32.mrf.mxu0 }
  0xf4   : > { %v394_v29 = vpop.f32.mrf.mxu2 }
  0xf5   : > { %v1611_v23 = vadd.f32 %v436_v18, %v394_v29 }
  0xf6   : > { %v1613_v33 = vpop.f32.mrf.mxu1 }
  0xf7   : > { %v441_v30 = vpop.f32.mrf.mxu3 }
  0xf9   : > { %v1615_v36 = vpop.f32.mrf.mxu0 }
  0xfc   : > { %v396_v37 = vpop.f32.mrf.mxu2 }
  0xfd   : > { %v1617_v40 = vadd.f32 %v438_v24, %v396_v37 }
  0xfe   : > { %v1619_v44 = vpop.f32.mrf.mxu1 }
  0xff   : > { %v443_v41 = vpop.f32.mrf.mxu3 }
 0x101   : > { %v666_v46 = vpop.f32.mrf.mxu0 }
 0x104   : > { %v399_v47 = vpop.f32.mrf.mxu2 }
 0x105   : > { %v1621_v50 = vadd.f32 %v441_v30, %v399_v47 }
 0x106   : > { %v1623_v53 = vpop.f32.mrf.mxu1 }
 0x107   : > { %v610_v52 = vpop.f32.mrf.mxu3 }
 0x108   : > { %v1628_v62 = vadd.f32 %v610_v52, %v1545_v45 }
 0x109   : > { %v668_v58 = vpop.f32.mrf.mxu0 }
 0x10a   : > { %v1814_v12 = vrot.slane %v1628_v62, 7 }
 0x10c   : > { %v401_v0 = vpop.f32.mrf.mxu2 }
 0x10d   : > { %v1630_v1 = vadd.f32 %v443_v41, %v401_v0 }
 0x10e   : > { %v502_v7 = vpop.f32.mrf.mxu1 }
 0x10f   : > { %v612_v2 = vpop.f32.mrf.mxu3  ;;  %v503_v8 = vadd.f32 %v502_v7, %v1518_v34 }
 0x110   : > { %v641_v5 = vadd.f32 %v612_v2, %v1551_v51 }
 0x111   : > { %v671_v11 = vpop.f32.mrf.mxu0  ;;  %v1636_v18 = vadd.f32 %v666_v46, %v503_v8 }
 0x112   : > { %v882_v16 = vrot.slane %v641_v5, 7  ;;  %v727_v5 = vadd.s32 16, %v1625_v59 }
 0x113   : > { %v1813_v52 = vrot.slane %v1636_v18, 1 }
 0x114   : > { %v904_v45 = vsel %vm893_vm2, %v1814_v12, %v882_v16  ;;  %v554_v21 = vpop.f32.mrf.mxu2 }
 0x115   : > { %v1643_v24 = vadd.f32 %v554_v21, %v1533_v42  ;;  %v726_v42 = vadd.s32 8, %v1625_v59 }
 0x116   : > { %v504_v29 = vpop.f32.mrf.mxu1 }
 0x117   : > { %v615_v51 = vpop.f32.mrf.mxu3  ;;  %v505_v30 = vadd.f32 %v504_v29, %v1529_v38 }
 0x118   : > { %v642_v34 = vadd.f32 %v615_v51, %v1565_v57  ;;  %v1655_v57 = vld [vmem:[%s1811_s2] ss:$0 sm:$0xff]  ;;  %v748_v51 = vand.u32 15, %v726_v42 }
 0x119   : > { %v673_v41 = vpop.f32.mrf.mxu0  ;;  %v697_v47 = vadd.f32 %v668_v58, %v505_v30 }
 0x11a   : > { %v883_v37 = vrot.slane %v642_v34, 7  ;;  %vm992_vm4 = vcmp.lt.s32.totalorder %v748_v51, 15 }
 0x11b   : > { %v907_v56 = vrot.slane %v697_v47, 1  ;;  %v755_v47 = vand.u32 15, %v727_v5 }
 0x11c   : > { %v903_v46 = vsel %vm893_vm2, %v882_v16, %v883_v37  ;;  %v556_v0 = vpop.f32.mrf.mxu2 }
 0x11d   : > { %v1661_v38 = vsel %vm918_vm3, %v1813_v52, %v907_v56  ;;  %v585_v58 = vadd.f32 %v556_v0, %v1547_v48  ;;  %vm933_vm5 = vcmp.gt.s32.totalorder %v755_v47, 0 }
 0x11e   : > { %v507_v8 = vpop.f32.mrf.mxu1 }
 0x11f   : > { %v617_v2 = vpop.f32.mrf.mxu3  ;;  %v713_v16 = vadd.f32 %v1655_v57, %v585_v58  ;;  %v508_v21 = vadd.f32 %v507_v8, %v1535_v43 }
 0x120   : > { %v643_v7 = vadd.f32 %v617_v2, %v1571_v63 }
 0x121   : > { %v980_v29 = vadd.f32 %v904_v45, %v713_v16  ;;  %v698_v30 = vadd.f32 %v671_v11, %v508_v21  ;;  %v676_v48 = vpop.f32.mrf.mxu0 }
 0x122   : > { %v884_v34 = vrot.slane %v643_v7, 7  ;;  %v969_v7 = vsel %vm933_vm5, %v903_v46, 0.0 }
 0x123   : > { %v908_v0 = vrot.slane %v698_v30, 1 }
 0x124   : > { %v902_v52 = vsel %vm893_vm2, %v883_v37, %v884_v34  ;;  %v559_v12 = vpop.f32.mrf.mxu2 }
 0x125   : > { %v928_v63 = vsel %vm918_vm3, %v907_v56, %v908_v0  ;;  %v586_v58 = vadd.f32 %v559_v12, %v1553_v54 }
 0x126   : > { %v1028_v42 = vsel %vm992_vm4, %v928_v63, 0.0  ;;  %v509_v11 = vpop.f32.mrf.mxu1 }
 0x127   : > { %v620_v43 = vpop.f32.mrf.mxu3  ;;  %v1040_v2 = vadd.f32 %v1028_v42, %v980_v29  ;;  %v714_v5 = vadd.f32 %v1655_v57, %v586_v58  ;;  %v510_v37 = vadd.f32 %v509_v11, %v1549_v49  ;;  %v728_v49 = vadd.s32 24, %v1625_v59 }
 0x128   : > { %v644_v45 = vadd.f32 %v620_v43, %v1584_v6 }
 0x129   : > { %vm1052_vm7 = vcmp.gt.f32.partialorder %v1040_v2, 0.0  ;;  %v1064_v54 = vmul.f32 0.01, %v1040_v2  ;;  %v981_v12 = vadd.f32 %v969_v7, %v714_v5  ;;  %v699_v56 = vadd.f32 %v673_v41, %v510_v37  ;;  %v678_v51 = vpop.f32.mrf.mxu0 }
 0x12a   : > { %v885_v8 = vrot.slane %v644_v45, 7  ;;  %v729_v41 = vadd.s32 32, %v1625_v59  ;;  %v762_v45 = vand.u32 15, %v728_v49 }
 0x12b   : > { %v1076_v16 = vsel %vm1052_vm7, %v1040_v2, %v1064_v54  ;;  %v909_v21 = vrot.slane %v699_v56, 1 }
 0x12c   : > { %v901_v6 = vsel %vm893_vm2, %v884_v34, %v885_v8  ;;  %1089 = vst.msk [vmem:[%s1680_s19 + $0x8] sm:$0xff] %vm1087_vm6, %v1076_v16  ;;  %v561_v46 = vpop.f32.mrf.mxu2  ;;  %v769_v37 = vand.u32 15, %v729_v41  ;;  %vm994_vm9 = vcmp.lt.s32.totalorder %v762_v45, 15  ;;  %v731_v45 = vadd.s32 48, %v1625_v59 }
 0x12d   : > { %v927_v29 = vsel %vm918_vm3, %v908_v0, %v909_v21  ;;  %v587_v30 = vadd.f32 %v561_v46, %v1567_v60 }
 0x12e   : > { %v1041_v63 = vadd.f32 %v981_v12, %v927_v29  ;;  %v512_v58 = vpop.f32.mrf.mxu1  ;;  %vm935_vm10 = vcmp.gt.s32.totalorder %v769_v37, 0 }
 0x12f   : > { %v622_v47 = vpop.f32.mrf.mxu3  ;;  %v715_v43 = vadd.f32 %v1655_v57, %v587_v30  ;;  %v513_v42 = vadd.f32 %v512_v58, %v1555_v55  ;;  %v971_v30 = vsel %vm935_vm10, %v901_v6, 0.0 }
 0x130   : > { %v645_v34 = vadd.f32 %v622_v47, %v1590_v14  ;;  %vm1053_vm8 = vcmp.gt.f32.partialorder %v1041_v63, 0.0  ;;  %v1065_v11 = vmul.f32 0.01, %v1041_v63 }
 0x131   : > { %v982_v5 = vadd.f32 %v902_v52, %v715_v43  ;;  %v700_v0 = vadd.f32 %v676_v48, %v513_v42  ;;  %v681_v49 = vpop.f32.mrf.mxu0 }
 0x132   : > { %v886_v2 = vrot.slane %v645_v34, 7  ;;  %v1077_v60 = vsel %vm1053_vm8, %v1041_v63, %v1065_v11 }
 0x133   : > { %1090 = vst.msk [vmem:[%s1680_s19 + $0x10] sm:$0xff] %vm1087_vm6, %v1077_v60  ;;  %v910_v54 = vrot.slane %v700_v0, 1 }
 0x134   : > { %v900_v7 = vsel %vm893_vm2, %v885_v8, %v886_v2  ;;  %v564_v14 = vpop.f32.mrf.mxu2 }
 0x135   : > { %v926_v12 = vsel %vm918_vm3, %v909_v21, %v910_v54  ;;  %v588_v55 = vadd.f32 %v564_v14, %v1574_v3 }
 0x136   : > { %v1030_v16 = vsel %vm994_vm9, %v926_v12, 0.0  ;;  %v514_v48 = vpop.f32.mrf.mxu1 }
 0x137   : > { %v625_v56 = vpop.f32.mrf.mxu3  ;;  %v1042_v46 = vadd.f32 %v1030_v16, %v982_v5  ;;  %v716_v8 = vadd.f32 %v1655_v57, %v588_v55  ;;  %v515_v29 = vadd.f32 %v514_v48, %v1569_v61 }
 0x138   : > { %v646_v52 = vadd.f32 %v625_v56, %v1599_v17  ;;  %v730_v17 = vadd.s32 40, %v1625_v59 }
 0x139   : > { %vm1054_vm11 = vcmp.gt.f32.partialorder %v1042_v46, 0.0  ;;  %v1066_v41 = vmul.f32 0.01, %v1042_v46  ;;  %v983_v21 = vadd.f32 %v971_v30, %v716_v8  ;;  %v701_v63 = vadd.f32 %v678_v51, %v515_v29  ;;  %v683_v12 = vpop.f32.mrf.mxu0 }
 0x13a   : > { %v887_v47 = vrot.slane %v646_v52, 7  ;;  %v776_v37 = vand.u32 15, %v730_v17 }
 0x13b   : > { %v1078_v34 = vsel %vm1054_vm11, %v1042_v46, %v1066_v41  ;;  %v911_v58 = vrot.slane %v701_v63, 1 }
 0x13c   : > { %v899_v3 = vsel %vm893_vm2, %v886_v2, %v887_v47  ;;  %1091 = vst.msk [vmem:[%s1680_s19 + $0x18] sm:$0xff] %vm1087_vm6, %v1078_v34  ;;  %v566_v43 = vpop.f32.mrf.mxu2  ;;  %vm996_vm13 = vcmp.lt.s32.totalorder %v776_v37, 15 }
 0x13d   : > { %v925_v42 = vsel %vm918_vm3, %v910_v54, %v911_v58  ;;  %v589_v61 = vadd.f32 %v566_v43, %v1586_v9  ;;  %v783_v9 = vand.u32 15, %v731_v45 }
 0x13e   : > { %v1043_v11 = vadd.f32 %v983_v21, %v925_v42  ;;  %v517_v2 = vpop.f32.mrf.mxu1 }
 0x13f   : > { %v627_v6 = vpop.f32.mrf.mxu3  ;;  %v717_v5 = vadd.f32 %v1655_v57, %v589_v61  ;;  %v518_v0 = vadd.f32 %v517_v2, %v1576_v4  ;;  %vm937_vm14 = vcmp.gt.s32.totalorder %v783_v9, 0  ;;  %v732_v61 = vadd.s32 56, %v1625_v59 }
 0x140   : > { %v647_v51 = vadd.f32 %v627_v6, %v1605_v22  ;;  %vm1055_vm12 = vcmp.gt.f32.partialorder %v1043_v11, 0.0  ;;  %v1067_v60 = vmul.f32 0.01, %v1043_v11  ;;  %v346_v22 = vadd.f32 %v1592_v15, %v1510_v27 }
 0x141   : > { %v984_v54 = vadd.f32 %v900_v7, %v717_v5  ;;  %v702_v55 = vadd.f32 %v681_v49, %v518_v0  ;;  %v973_v15 = vsel %vm937_vm14, %v899_v3, 0.0  ;;  %v686_v17 = vpop.f32.mrf.mxu0  ;;  %v790_v0 = vand.u32 15, %v732_v61 }
 0x142   : > { %v888_v14 = vrot.slane %v647_v51, 7  ;;  %v1079_v56 = vsel %vm1055_vm12, %v1043_v11, %v1067_v60  ;;  %v733_v11 = vadd.s32 64, %v1625_v59 }
 0x143   : > { %1092 = vst.msk [vmem:[%s1680_s19 + $0x20] sm:$0xff] %vm1087_vm6, %v1079_v56  ;;  %v912_v52 = vrot.slane %v702_v55, 1  ;;  %v351_v56 = vadd.f32 %v1607_v25, %v1527_v35  ;;  %vm998_vm1 = vcmp.lt.s32.totalorder %v790_v0, 15 }
 0x144   : > { %v898_v16 = vsel %vm893_vm2, %v887_v47, %v888_v14  ;;  %v569_v4 = vpop.f32.mrf.mxu2 }
 0x145   : > { %v924_v48 = vsel %vm918_vm3, %v911_v58, %v912_v52  ;;  %v590_v46 = vadd.f32 %v569_v4, %v346_v22 }
 0x146   : > { %v1032_v49 = vsel %vm996_vm13, %v924_v48, 0.0  ;;  %v519_v29 = vpop.f32.mrf.mxu1 }
 0x147   : > { %v630_v7 = vpop.f32.mrf.mxu3  ;;  %v1044_v30 = vadd.f32 %v1032_v49, %v984_v54  ;;  %v718_v47 = vadd.f32 %v1655_v57, %v590_v46  ;;  %v520_v27 = vadd.f32 %v519_v29, %v1588_v10  ;;  %v797_v54 = vand.u32 15, %v733_v11 }
 0x148   : > { %v648_v8 = vadd.f32 %v630_v7, %v1611_v23  ;;  %v348_v23 = vadd.f32 %v1601_v19, %v1514_v31 }
 0x149   : > { %vm1056_vm15 = vcmp.gt.f32.partialorder %v1044_v30, 0.0  ;;  %v1068_v21 = vmul.f32 0.01, %v1044_v30  ;;  %v985_v63 = vadd.f32 %v973_v15, %v718_v47  ;;  %v703_v34 = vadd.f32 %v683_v12, %v520_v27 }
 0x14a   : > { %v889_v41 = vrot.slane %v648_v8, 7  ;;  %vm939_vm4 = vcmp.gt.s32.totalorder %v797_v54, 0 }
 0x14b   : > { %v1080_v43 = vsel %vm1056_vm15, %v1044_v30, %v1068_v21  ;;  %v913_v42 = vrot.slane %v703_v34, 1 }
 0x14c   : > { %v897_v58 = vsel %vm893_vm2, %v888_v14, %v889_v41  ;;  %1093 = vst.msk [vmem:[%s1680_s19 + $0x28] sm:$0xff] %vm1087_vm6, %v1080_v43  ;;  %v571_v10 = vpop.f32.mrf.mxu2  ;;  %v735_v43 = vadd.s32 80, %v1625_v59 }
 0x14d   : > { %v923_v3 = vsel %vm918_vm3, %v912_v52, %v913_v42  ;;  %v591_v6 = vadd.f32 %v571_v10, %v348_v23  ;;  %v975_v8 = vsel %vm939_vm4, %v897_v58, 0.0 }
 0x14e   : > { %v1045_v51 = vadd.f32 %v985_v63, %v923_v3  ;;  %v522_v5 = vpop.f32.mrf.mxu1  ;;  %v734_v63 = vadd.s32 72, %v1625_v59 }
 0x14f   : > { %v632_v45 = vpop.f32.mrf.mxu3  ;;  %v719_v31 = vadd.f32 %v1655_v57, %v591_v6  ;;  %v523_v19 = vadd.f32 %v522_v5, %v1594_v13  ;;  %v688_v13 = vpop.f32.mrf.mxu0  ;;  %v811_v5 = vand.u32 15, %v735_v43 }
 0x150   : > { %v649_v2 = vadd.f32 %v632_v45, %v1617_v40  ;;  %vm1057_vm0 = vcmp.gt.f32.partialorder %v1045_v51, 0.0  ;;  %v1069_v37 = vmul.f32 0.01, %v1045_v51  ;;  %v804_v6 = vand.u32 15, %v734_v63 }
 0x151   : > { %v986_v14 = vadd.f32 %v898_v16, %v719_v31  ;;  %v704_v12 = vadd.f32 %v686_v17, %v523_v19  ;;  %v712_v31 = vadd.f32 %v1655_v57, %v1643_v24  ;;  %vm941_vm10 = vcmp.gt.s32.totalorder %v811_v5, 0 }
 0x152   : > { %v890_v60 = vrot.slane %v649_v2, 7  ;;  %v1081_v55 = vsel %vm1057_vm0, %v1045_v51, %v1069_v37  ;;  %v356_v37 = vadd.f32 %v1619_v44, %v1512_v28  ;;  %vm1000_vm9 = vcmp.lt.s32.totalorder %v804_v6, 15 }
 0x153   : > { %1094 = vst.msk [vmem:[%s1680_s19 + $0x30] sm:$0xff] %vm1087_vm6, %v1081_v55  ;;  %v914_v40 = vrot.slane %v704_v12, 1 }
 0x154   : > { %v896_v9 = vsel %vm893_vm2, %v889_v41, %v890_v60  ;;  %v574_v22 = vpop.f32.mrf.mxu2  ;;  %v353_v41 = vadd.f32 %v1613_v33, %v1531_v39 }
 0x155   : > { %v922_v52 = vsel %vm918_vm3, %v913_v42, %v914_v40  ;;  %v592_v4 = vadd.f32 %v574_v22, %v351_v56  ;;  %v736_v22 = vadd.s32 88, %v1625_v59 }
 0x156   : > { %v1034_v48 = vsel %vm998_vm1, %v922_v52, 0.0  ;;  %v524_v7 = vpop.f32.mrf.mxu1 }
 0x157   : > { %v635_v16 = vpop.f32.mrf.mxu3  ;;  %v1046_v49 = vadd.f32 %v1034_v48, %v986_v14  ;;  %v720_v35 = vadd.f32 %v1655_v57, %v592_v4  ;;  %v525_v25 = vadd.f32 %v524_v7, %v1603_v20  ;;  %v741_v20 = vand.u32 15, %v1625_v59  ;;  %v691_v39 = vpop.f32.mrf.mxu0 }
 0x158   : > { %v650_v46 = vadd.f32 %v635_v16, %v1621_v50  ;;  %v358_v7 = vadd.f32 %v1623_v53, %v1516_v32 }
 0x159   : > { %vm1058_vm5 = vcmp.gt.f32.partialorder %v1046_v49, 0.0  ;;  %v1070_v30 = vmul.f32 0.01, %v1046_v49  ;;  %v987_v47 = vadd.f32 %v975_v8, %v720_v35  ;;  %v705_v27 = vadd.f32 %v688_v13, %v525_v25 }
 0x15a   : > { %v891_v29 = vrot.slane %v650_v46, 7  ;;  %vm931_vm8 = vcmp.gt.s32.totalorder %v741_v20, 0  ;;  %v818_v35 = vand.u32 15, %v736_v22 }
 0x15b   : > { %v1082_v50 = vsel %vm1058_vm5, %v1046_v49, %v1070_v30  ;;  %v915_v21 = vrot.slane %v705_v27, 1 }
 0x15c   : > { %v895_v15 = vsel %vm893_vm2, %v890_v60, %v891_v29  ;;  %1095 = vst.msk [vmem:[%s1680_s19 + $0x38] sm:$0xff] %vm1087_vm6, %v1082_v50  ;;  %v576_v34 = vpop.f32.mrf.mxu2  ;;  %vm1002_vm12 = vcmp.lt.s32.totalorder %v818_v35, 15 }
 0x15d   : > { %v921_v58 = vsel %vm918_vm3, %v914_v40, %v915_v21  ;;  %v593_v17 = vadd.f32 %v576_v34, %v353_v41  ;;  %v977_v52 = vsel %vm941_vm10, %v895_v15, 0.0 }
 0x15e   : > { %v1047_v42 = vadd.f32 %v987_v47, %v921_v58  ;;  %v527_v33 = vpop.f32.mrf.mxu1  ;;  %v1816_v47 = vrot.slane %v1636_v18, 1 }
 0x15f   : > { %v637_v23 = vpop.f32.mrf.mxu3  ;;  %v721_v10 = vadd.f32 %v1655_v57, %v593_v17  ;;  %v528_v3 = vadd.f32 %v527_v33, %v1609_v26  ;;  %v693_v4 = vpop.f32.mrf.mxu0 }
 0x160   : > { %v651_v61 = vadd.f32 %v637_v23, %v1630_v1  ;;  %vm1059_vm7 = vcmp.gt.f32.partialorder %v1047_v42, 0.0  ;;  %v1071_v45 = vmul.f32 0.01, %v1047_v42  ;;  %v1815_v1 = vrot.slane %v1628_v62, 7 }
 0x161   : > { %v988_v51 = vadd.f32 %v896_v9, %v721_v10  ;;  %v706_v2 = vadd.f32 %v691_v39, %v528_v3 }
 0x162   : > { %v892_v11 = vrot.slane %v651_v61, 7  ;;  %v1083_v19 = vsel %vm1059_vm7, %v1047_v42, %v1071_v45 }
 0x163   : > { %1096 = vst.msk [vmem:[%s1680_s19 + $0x40] sm:$0xff] %vm1087_vm6, %v1083_v19  ;;  %v916_v14 = vrot.slane %v706_v2, 1 }
 0x164   : > { %v905_v0 = vsel %vm893_vm2, %v892_v11, %v1815_v1  ;;  %v894_v26 = vsel %vm893_vm2, %v891_v29, %v892_v11  ;;  %v579_v54 = vpop.f32.mrf.mxu2 }
 0x165   : > { %v967_v60 = vsel %vm931_vm8, %v905_v0, 0.0  ;;  %v920_v24 = vsel %vm918_vm3, %v915_v21, %v916_v14  ;;  %v594_v62 = vadd.f32 %v579_v54, %v356_v37 }
 0x166   : > { %v979_v12 = vadd.f32 %v967_v60, %v712_v31  ;;  %v1036_v9 = vsel %vm1000_vm9, %v920_v24, 0.0  ;;  %v529_v56 = vpop.f32.mrf.mxu1 }
 0x167   : > { %v1048_v40 = vadd.f32 %v1036_v9, %v988_v51  ;;  %v722_v28 = vadd.f32 %v1655_v57, %v594_v62  ;;  %v530_v44 = vadd.f32 %v529_v56, %v1615_v36 }
 0x168   : > { %v1039_v55 = vadd.f32 %v979_v12, %v1661_v38 }
 0x169   : > { %vm1060_vm11 = vcmp.gt.f32.partialorder %v1048_v40, 0.0  ;;  %v1072_v16 = vmul.f32 0.01, %v1048_v40  ;;  %v989_v48 = vadd.f32 %v977_v52, %v722_v28  ;;  %v707_v46 = vadd.f32 %v693_v4, %v530_v44 }
 0x16a   : > { %vm1051_vm2 = vcmp.gt.f32.partialorder %v1039_v55, 0.0  ;;  %v1063_v13 = vmul.f32 0.01, %v1039_v55 }
 0x16b   : > { %v1084_v49 = vsel %vm1060_vm11, %v1048_v40, %v1072_v16  ;;  %v917_v36 = vrot.slane %v707_v46, 1 }
 0x16c   : > { %v1075_v38 = vsel %vm1051_vm2, %v1039_v55, %v1063_v13  ;;  %1097 = vst.msk [vmem:[%s1680_s19 + $0x48] sm:$0xff] %vm1087_vm6, %v1084_v49  ;;  %v581_v25 = vpop.f32.mrf.mxu2 }
 0x16d   : > { %1088 = vst.msk [vmem:[%s1680_s19] sm:$0xff] %vm1087_vm6, %v1075_v38  ;;  %v919_v8 = vsel %vm918_vm3, %v916_v14, %v917_v36  ;;  %v595_v29 = vadd.f32 %v581_v25, %v358_v7  ;;  %v930_v32 = vsel %vm918_vm3, %v917_v36, %v1816_v47 }
 0x16e   : > { %v1049_v30 = vadd.f32 %v989_v48, %v919_v8  ;;  %v1038_v50 = vsel %vm1002_vm12, %v930_v32, 0.0 }
 0x16f   : > { %v723_v53 = vadd.f32 %v1655_v57, %v595_v29 }
 0x170   : > { %vm1061_vm13 = vcmp.gt.f32.partialorder %v1049_v30, 0.0  ;;  %v1073_v27 = vmul.f32 0.01, %v1049_v30 }
 0x171   : > { %v990_v15 = vadd.f32 %v894_v26, %v723_v53 }
 0x172   : > { %v1085_v41 = vsel %vm1061_vm13, %v1049_v30, %v1073_v27 }
 0x173   : > { %1098 = vst.msk [vmem:[%s1680_s19 + $0x50] sm:$0xff] %vm1087_vm6, %v1085_v41  ;;  %v1050_v21 = vadd.f32 %v1038_v50, %v990_v15 }
 0x175   : > { %vm1062_vm14 = vcmp.gt.f32.partialorder %v1050_v21, 0.0  ;;  %v1074_v63 = vmul.f32 0.01, %v1050_v21 }
 0x177   : > { %v1086_v34 = vsel %vm1062_vm14, %v1050_v21, %v1074_v63 }
 0x178   : > { %1099 = vst.msk [vmem:[%s1680_s19 + $0x58] sm:$0xff] %vm1087_vm6, %v1086_v34 }
 0x179 PF: > { %s13_s14 = sadd.s32 1, %s1345_s14   ;;  %s1817_s12 = smov %s1341_s13 }
 0x17a   : > { %p10_p5 = scmp.ge.s32.totalorder %s13_s14, 4   ;;  %s1818_s13 = smov %s1820_s15 }
 0x17c   :  { %12 = sbr.rel (!%p10_p5) target bundleno = 2 (0x2), region = 70 }

</bundles_post_ra>
